<compile_context>
chip_gen: v7x
topology: tpu7x:2x2x1
jax: 0.10.0
libtpu: 0.0.40
codegen_flags: <defaults>
</compile_context>

<pallas_src>
import jax
import jax.numpy as jnp
from jax.experimental import pallas as pl
from jax.experimental.pallas import tpu as pltpu


_BN_EPS = 1e-5


# --------------------------------------------------------------------------- kernel
def _make_fused_kernel(n_groups: int, relu: bool, inv_valid_m: float):
    """Fused '1x1 conv (sum over groups) -> BatchNorm(batch stats) -> [ReLU]'.

    Ref layout (all 2-D, lane dim = pixels M, possibly zero-padded to 128k):
      x_0..x_{G-1} : (Ci_g, M)
      w_0..w_{G-1} : (Co, Ci_g)
      gb           : (Co, 2)   column 0 = gamma, column 1 = beta
      out          : (Co, M)
    Padded lanes of every x are zero, so the single-pass BN sums are exact when
    divided by the true pixel count (inv_valid_m).
    """

    def kernel(*refs):
        xs = refs[:n_groups]
        ws = refs[n_groups:2 * n_groups]
        gb_ref = refs[2 * n_groups]
        o_ref = refs[2 * n_groups + 1]

        # 1x1 conv == matmul on the MXU (vector-extended slot); f32 accumulation.
        acc = jnp.dot(ws[0][...], xs[0][...], preferred_element_type=jnp.float32)
        for g in range(1, n_groups):
            acc = acc + jnp.dot(ws[g][...], xs[g][...],
                                preferred_element_type=jnp.float32)

        # BatchNorm2d (training mode): single-traversal batch stats on the
        # VMEM-resident accumulator (lane-axis reductions on the XLU).
        # var = E[x^2] - mean^2 (f32; fine at these dynamic ranges).
        s = jnp.sum(acc, axis=1, keepdims=True)
        ss = jnp.sum(acc * acc, axis=1, keepdims=True)
        mean = s * inv_valid_m
        var = ss * inv_valid_m - mean * mean

        gb = gb_ref[...]
        gamma = gb[:, 0:1]
        beta = gb[:, 1:2]
        scale = gamma * jax.lax.rsqrt(var + _BN_EPS)
        shift = beta - mean * scale
        y = acc * scale + shift
        if relu:
            y = jnp.maximum(y, 0.0)
        o_ref[...] = y.astype(o_ref.dtype)

    return kernel


def _padded_bytes_f32(shape):
    """f32 VMEM footprint of a 2-D buffer after (8, 128) tiling."""
    s0 = -(-shape[0] // 8) * 8
    s1 = -(-shape[1] // 128) * 128
    return 4 * s0 * s1


def fused_conv_bn_act(groups, gb, *, relu=True, valid_m=None):
    """out = ReLU(BN(sum_g w_g @ x_g)) in one Pallas call.

    `groups` is a list of (x (Ci, M), w (Co, Ci)) pairs sharing the lane extent M.
    Single full-extent VMEM block (grid length 1): no per-step pipeline overhead.
    For production sizes: tile M with a "parallel" grid axis (v7x has 2 TCs) and
    switch BN to a 2-pass / cross-tile stats scheme; size the tile against v7x's
    64 MiB physical / 32 MiB scoped VMEM, raising vmem_limit_bytes if needed.
    """
    n = len(groups)
    mp = groups[0][0].shape[1]
    co = groups[0][1].shape[0]
    if valid_m is None:
        valid_m = mp

    inputs = [x for x, _ in groups] + [w for _, w in groups] + [gb]

    # Padded-shape VMEM budget (inputs + output, x2 buffers) vs v7x scoped default.
    vmem_bytes = 2 * (sum(_padded_bytes_f32(a.shape) for a in inputs)
                      + _padded_bytes_f32((co, mp)))
    assert vmem_bytes < 32 * 1024 * 1024, (
        "tile M (parallel grid axis + 2-pass BN) — single block exceeds VMEM budget")

    return pl.pallas_call(
        _make_fused_kernel(n, relu, 1.0 / float(valid_m)),
        out_shape=jax.ShapeDtypeStruct((co, mp), jnp.float32),
        grid_spec=pltpu.PrefetchScalarGridSpec(
            num_scalar_prefetch=0,
            grid=(1,),
            in_specs=[pl.BlockSpec(a.shape, lambda i: (0, 0)) for a in inputs],
            out_specs=pl.BlockSpec((co, mp), lambda i: (0, 0)),
        ),
        compiler_params=pltpu.CompilerParams(
            dimension_semantics=("arbitrary",)),
    )(*inputs)


# --------------------------------------------------------------------------- modules
def fourier_unit(x, w, gb):
    """FourierUnit: rfft2 -> fused (1x1 conv + BN + ReLU) -> irfft2.

    x is (C, B, H, W).  Real and imaginary parts are channel-concatenated into a
    single (2C, M) operand (channel order [re-block, im-block]; a fixed permutation
    of PyTorch's interleaved (re, im) order — equivalent for fresh random init).
    The lane extent is zero-padded to a multiple of 128 so stores are lane-dense;
    BN uses the true pixel count as denominator.
    """
    c, b, h, wd = x.shape
    # TODO(synk): rfft2/irfft2 have no Pallas primitive; computed with jnp.fft.
    f = jnp.fft.rfft2(x, axes=(-2, -1), norm="ortho")         # (C, B, H, Wr) complex64
    wr = f.shape[-1]
    m = b * h * wr
    fr = jnp.concatenate([f.real, f.imag], axis=0).reshape(2 * c, m)
    mp = -(-m // 128) * 128
    if mp != m:
        fr = jnp.pad(fr, ((0, 0), (0, mp - m)))               # zero lanes -> BN-safe

    out = fused_conv_bn_act([(fr, w)], gb, relu=True, valid_m=m)   # (2C, Mp)
    out = out[:, :m]
    zr = out[:c].reshape(c, b, h, wr)
    zi = out[c:].reshape(c, b, h, wr)
    z = jax.lax.complex(zr, zi)
    return jnp.fft.irfft2(z, s=(h, wd), axes=(-2, -1), norm="ortho").astype(jnp.float32)


def ffc_bn_act_forward(x, p):
    """FFC_BN_ACT forward.  x: (C_in=8, B, H, W) channels-leading layout.

      out_xl = ReLU(BN_l([w_l2l | w_g2l] @ x))
      out_xg = ReLU(BN_g([w_l2g | 0] @ x + conv2 @ (y + fu(y) + lfu(y))))
    with y = ReLU(BN1([0 | conv1] @ x)) (SpectralTransform.conv1 on the global half).
    """
    c_in, b, h, w = x.shape
    m = b * h * w
    x2 = x.reshape(c_in, m)

    # ---- local output: one fused kernel over the unsplit 8-channel input.
    out_l = fused_conv_bn_act([(x2, p["w_l_cat"])], p["bn_l"], relu=True)      # (8, M)

    # ---- SpectralTransform.conv1 (global half selected via zeroed weight cols).
    half = p["st_conv1_w"].shape[0]
    y2 = fused_conv_bn_act([(x2, p["st_conv1_w"])], p["st_bn1"], relu=True)    # (4, M)
    y = y2.reshape(half, b, h, w)

    # ---- global FourierUnit.
    fu_out = fourier_unit(y, p["fu_w"], p["fu_bn"])                            # (4,B,H,W)

    # ---- LFU: quadrant fold of channel block y[:cm//4] (= 1 channel) via a single
    # reshape/transpose (channel order [TL, BL, TR, BR], as in the torch splits).
    s = h // 2
    xq = y[0].reshape(b, 2, s, 2, s)                       # (B, hq, h', wq, w')
    xs = jnp.transpose(xq, (3, 1, 0, 2, 4)).reshape(4, b, s, s)
    lfu_out = fourier_unit(xs, p["lfu_w"], p["lfu_bn"])                        # (4,B,s,s)

    # ---- conv2 input: y + fu + 2x2-replicated lfu, zero-padded to 8 sublanes.
    # XLA fuses tile + adds + pad into one elementwise fusion; the out_g kernel then
    # sees a single lane-dense (8, M) operand instead of three padded (4, M) ones.
    pre = y + fu_out + jnp.tile(lfu_out, (1, 1, 2, 2))
    pre8 = jnp.pad(pre.reshape(half, m), ((0, 8 - half), (0, 0)))

    # ---- global output: one fused kernel (l2g path + conv2 path + BN + ReLU).
    out_g = fused_conv_bn_act(
        [(x2, p["w_l2g_cat"]), (pre8, p["st_conv2_w"])], p["bn_g"], relu=True)  # (8, M)

    out_cl = p["w_l_cat"].shape[0]
    out_cg = p["w_l2g_cat"].shape[0]
    return out_l.reshape(out_cl, b, h, w), out_g.reshape(out_cg, b, h, w)


# --------------------------------------------------------------------------- params
def make_params(key):
    """Deterministic parameter init (shapes dictated by the module's __init__)."""
    in_cl, in_cg, out_cl, out_cg = 4, 4, 8, 8
    half = out_cg // 2                      # SpectralTransform hidden width = 4
    ks = jax.random.split(key, 7)

    def w(k, co, ci):                       # 1x1 conv weight stored as (Cout, Cin)
        return jax.random.normal(k, (co, ci), jnp.float32) / jnp.sqrt(float(ci))

    def bn(c):                              # fresh BatchNorm2d: gamma=1, beta=0
        return jnp.concatenate([jnp.ones((c, 1), jnp.float32),
                                jnp.zeros((c, 1), jnp.float32)], axis=1)

    w_l2l = w(ks[0], out_cl, in_cl)
    w_g2l = w(ks[1], out_cl, in_cg)
    w_l2g = w(ks[2], out_cg, in_cl)
    st_conv1 = w(ks[3], half, in_cg)
    st_conv2 = w(ks[6], out_cg, half)

    z = jnp.zeros
    return {
        # FFC branch convs, channel-concatenated so the kernel reads the unsplit input.
        "w_l_cat": jnp.concatenate([w_l2l, w_g2l], axis=1),                       # (8, 8)
        "w_l2g_cat": jnp.concatenate([w_l2g, z((out_cg, in_cg), jnp.float32)], 1),  # (8, 8)
        # SpectralTransform.conv1 (zero cols select the global half of the input).
        "st_conv1_w": jnp.concatenate([z((half, in_cl), jnp.float32), st_conv1], 1),  # (4, 8)
        "st_bn1": bn(half),
        # FourierUnit convs: full (2C, 2C) weights (fan-in = 2C, matching the module),
        # input/output channel order [re-block, im-block].
        "fu_w": w(ks[4], 2 * half, 2 * half),
        "fu_bn": bn(2 * half),
        "lfu_w": w(ks[5], 2 * half, 2 * half),
        "lfu_bn": bn(2 * half),
        # SpectralTransform.conv2; zero cols match the sublane-padded conv2 input.
        "st_conv2_w": jnp.concatenate([st_conv2, z((out_cg, 8 - half), jnp.float32)], 1),  # (8, 8)
        # FFC_BN_ACT norms.
        "bn_l": bn(out_cl),
        "bn_g": bn(out_cg),
    }


# --------------------------------------------------------------------------- main
if __name__ == "__main__":
    key = jax.random.PRNGKey(0)
    k_in, k_par = jax.random.split(key)

    B, H, W = 2, 16, 16
    in_cl, in_cg = 4, 4
    # PyTorch-style NCHW input; single relayout to channels-leading (C, B, H, W)
    # so every Pallas kernel sees pixels (B*H*W) in the lane dimension.
    x_nchw = jax.random.normal(k_in, (B, in_cl + in_cg, H, W), jnp.float32)
    x = jnp.transpose(x_nchw, (1, 0, 2, 3))

    params = make_params(k_par)

    fwd = jax.jit(ffc_bn_act_forward)
    out_l, out_g = fwd(x, params)
    jax.block_until_ready((out_l, out_g))

    # Back to NCHW for the module-level shape check.
    out_l_nchw = jnp.transpose(out_l, (1, 0, 2, 3))
    out_g_nchw = jnp.transpose(out_g, (1, 0, 2, 3))
    assert out_l_nchw.shape == (B, 8, H, W) and out_g_nchw.shape == (B, 8, H, W)
    assert bool(jnp.all(jnp.isfinite(out_l_nchw)))
    assert bool(jnp.all(jnp.isfinite(out_g_nchw)))
    print("KERNEL_OK")
</pallas_src>

<mosaic_0001>
module attributes {stable_mosaic.version = 11 : i64} {
  func.func @kernel(%arg0: i32, %arg1: memref<8x512xf32, #tpu.memory_space<vmem>>, %arg2: memref<4x8xf32, #tpu.memory_space<vmem>>, %arg3: memref<4x2xf32, #tpu.memory_space<vmem>>, %arg4: memref<4x512xf32, #tpu.memory_space<vmem>>) attributes {dimension_semantics = [#tpu.dimension_semantics<arbitrary>], iteration_bounds = array<i64: 1>, scalar_prefetch = 0 : i64, scratch_operands = 0 : i64, tpu.core_type = #tpu.core_type<tc>, window_params = [{pipeline_mode = #tpu.pipeline_mode<synchronous>, transform_indices = @transform_0, window_bounds = array<i64: 8, 512>}, {pipeline_mode = #tpu.pipeline_mode<synchronous>, transform_indices = @transform_1, window_bounds = array<i64: 4, 8>}, {pipeline_mode = #tpu.pipeline_mode<synchronous>, transform_indices = @transform_2, window_bounds = array<i64: 4, 2>}, {pipeline_mode = #tpu.pipeline_mode<synchronous>, transform_indices = @transform_3, window_bounds = array<i64: 4, 512>}]} {
    %c0 = arith.constant 0 : index
    %c0_0 = arith.constant 0 : index
    %0 = vector.load %arg2[%c0, %c0_0] : memref<4x8xf32, #tpu.memory_space<vmem>>, vector<4x8xf32>
    %c0_1 = arith.constant 0 : index
    %c0_2 = arith.constant 0 : index
    %1 = vector.load %arg1[%c0_1, %c0_2] : memref<8x512xf32, #tpu.memory_space<vmem>>, vector<8x512xf32>
    %cst = arith.constant dense<0.000000e+00> : vector<4x512xf32>
    %2 = tpu.matmul %0, %1, %cst {dimension_numbers = #tpu.dot_dimension_numbers<[1], [0], [0], [1], [0, 0, 1, 1], [], []>} : vector<4x8xf32>, vector<8x512xf32>, vector<4x512xf32> -> vector<4x512xf32>
    %cst_3 = arith.constant dense<0.000000e+00> : vector<4xf32>
    %3 = vector.multi_reduction <add>, %2, %cst_3 [1] : vector<4x512xf32> to vector<4xf32>
    %4 = vector.shape_cast %3 : vector<4xf32> to vector<4x1xf32>
    %5 = arith.mulf %2, %2 : vector<4x512xf32>
    %cst_4 = arith.constant dense<0.000000e+00> : vector<4xf32>
    %6 = vector.multi_reduction <add>, %5, %cst_4 [1] : vector<4x512xf32> to vector<4xf32>
    %7 = vector.shape_cast %6 : vector<4xf32> to vector<4x1xf32>
    %cst_5 = arith.constant 0.001953125 : f32
    %8 = vector.broadcast %cst_5 : f32 to vector<4x1xf32>
    %9 = arith.mulf %4, %8 : vector<4x1xf32>
    %cst_6 = arith.constant 0.001953125 : f32
    %10 = vector.broadcast %cst_6 : f32 to vector<4x1xf32>
    %11 = arith.mulf %7, %10 : vector<4x1xf32>
    %12 = arith.mulf %9, %9 : vector<4x1xf32>
    %13 = arith.subf %11, %12 : vector<4x1xf32>
    %c0_7 = arith.constant 0 : index
    %c0_8 = arith.constant 0 : index
    %14 = vector.load %arg3[%c0_7, %c0_8] : memref<4x2xf32, #tpu.memory_space<vmem>>, vector<4x2xf32>
    %15 = vector.extract_strided_slice %14 {offsets = [0, 0], sizes = [4, 1], strides = [1, 1]} : vector<4x2xf32> to vector<4x1xf32>
    %16 = vector.extract_strided_slice %14 {offsets = [0, 1], sizes = [4, 1], strides = [1, 1]} : vector<4x2xf32> to vector<4x1xf32>
    %cst_9 = arith.constant 9.99999974E-6 : f32
    %17 = vector.broadcast %cst_9 : f32 to vector<4x1xf32>
    %18 = arith.addf %13, %17 : vector<4x1xf32>
    %19 = math.rsqrt %18 : vector<4x1xf32>
    %20 = arith.mulf %15, %19 : vector<4x1xf32>
    %21 = arith.mulf %9, %20 : vector<4x1xf32>
    %22 = arith.subf %16, %21 : vector<4x1xf32>
    %23 = vector.broadcast %20 : vector<4x1xf32> to vector<4x512xf32>
    %24 = arith.mulf %2, %23 : vector<4x512xf32>
    %25 = vector.broadcast %22 : vector<4x1xf32> to vector<4x512xf32>
    %26 = arith.addf %24, %25 : vector<4x512xf32>
    %cst_10 = arith.constant 0.000000e+00 : f32
    %27 = vector.broadcast %cst_10 : f32 to vector<4x512xf32>
    %28 = arith.maximumf %26, %27 : vector<4x512xf32>
    %c0_11 = arith.constant 0 : index
    %c0_12 = arith.constant 0 : index
    %29 = vector.load %arg4[%c0_11, %c0_12] : memref<4x512xf32, #tpu.memory_space<vmem>>, vector<4x512xf32>
    tpu.vector_store %arg4[%c0_11, %c0_12], %28 {strides = array<i32>} : memref<4x512xf32, #tpu.memory_space<vmem>>, vector<4x512xf32>,
    return
  }
  func.func @transform_0(%arg0: i32) -> (i32, i32) {
    %c0_i32 = arith.constant 0 : i32
    %c0_i32_0 = arith.constant 0 : i32
    %c0_i32_1 = arith.constant 0 : i32
    return %c0_i32, %c0_i32_0 : i32, i32
  }
  func.func @transform_1(%arg0: i32) -> (i32, i32) {
    %c0_i32 = arith.constant 0 : i32
    %c0_i32_0 = arith.constant 0 : i32
    %c0_i32_1 = arith.constant 0 : i32
    return %c0_i32, %c0_i32_0 : i32, i32
  }
  func.func @transform_2(%arg0: i32) -> (i32, i32) {
    %c0_i32 = arith.constant 0 : i32
    %c0_i32_0 = arith.constant 0 : i32
    %c0_i32_1 = arith.constant 0 : i32
    return %c0_i32, %c0_i32_0 : i32, i32
  }
  func.func @transform_3(%arg0: i32) -> (i32, i32) {
    %c0_i32 = arith.constant 0 : i32
    %c0_i32_0 = arith.constant 0 : i32
    %c0_i32_1 = arith.constant 0 : i32
    return %c0_i32, %c0_i32_0 : i32, i32
  }
}

module attributes {stable_mosaic.version = 11 : i64} {
  func.func @kernel(%arg0: i32, %arg1: memref<8x384xf32, #tpu.memory_space<vmem>>, %arg2: memref<8x8xf32, #tpu.memory_space<vmem>>, %arg3: memref<8x2xf32, #tpu.memory_space<vmem>>, %arg4: memref<8x384xf32, #tpu.memory_space<vmem>>) attributes {dimension_semantics = [#tpu.dimension_semantics<arbitrary>], iteration_bounds = array<i64: 1>, scalar_prefetch = 0 : i64, scratch_operands = 0 : i64, tpu.core_type = #tpu.core_type<tc>, window_params = [{pipeline_mode = #tpu.pipeline_mode<synchronous>, transform_indices = @transform_0, window_bounds = array<i64: 8, 384>}, {pipeline_mode = #tpu.pipeline_mode<synchronous>, transform_indices = @transform_1, window_bounds = array<i64: 8, 8>}, {pipeline_mode = #tpu.pipeline_mode<synchronous>, transform_indices = @transform_2, window_bounds = array<i64: 8, 2>}, {pipeline_mode = #tpu.pipeline_mode<synchronous>, transform_indices = @transform_3, window_bounds = array<i64: 8, 384>}]} {
    %c0 = arith.constant 0 : index
    %c0_0 = arith.constant 0 : index
    %0 = vector.load %arg2[%c0, %c0_0] : memref<8x8xf32, #tpu.memory_space<vmem>>, vector<8x8xf32>
    %c0_1 = arith.constant 0 : index
    %c0_2 = arith.constant 0 : index
    %1 = vector.load %arg1[%c0_1, %c0_2] : memref<8x384xf32, #tpu.memory_space<vmem>>, vector<8x384xf32>
    %cst = arith.constant dense<0.000000e+00> : vector<8x384xf32>
    %2 = tpu.matmul %0, %1, %cst {dimension_numbers = #tpu.dot_dimension_numbers<[1], [0], [0], [1], [0, 0, 1, 1], [], []>} : vector<8x8xf32>, vector<8x384xf32>, vector<8x384xf32> -> vector<8x384xf32>
    %cst_3 = arith.constant dense<0.000000e+00> : vector<8xf32>
    %3 = vector.multi_reduction <add>, %2, %cst_3 [1] : vector<8x384xf32> to vector<8xf32>
    %4 = vector.shape_cast %3 : vector<8xf32> to vector<8x1xf32>
    %5 = arith.mulf %2, %2 : vector<8x384xf32>
    %cst_4 = arith.constant dense<0.000000e+00> : vector<8xf32>
    %6 = vector.multi_reduction <add>, %5, %cst_4 [1] : vector<8x384xf32> to vector<8xf32>
    %7 = vector.shape_cast %6 : vector<8xf32> to vector<8x1xf32>
    %cst_5 = arith.constant 0.00347222225 : f32
    %8 = vector.broadcast %cst_5 : f32 to vector<8x1xf32>
    %9 = arith.mulf %4, %8 : vector<8x1xf32>
    %cst_6 = arith.constant 0.00347222225 : f32
    %10 = vector.broadcast %cst_6 : f32 to vector<8x1xf32>
    %11 = arith.mulf %7, %10 : vector<8x1xf32>
    %12 = arith.mulf %9, %9 : vector<8x1xf32>
    %13 = arith.subf %11, %12 : vector<8x1xf32>
    %c0_7 = arith.constant 0 : index
    %c0_8 = arith.constant 0 : index
    %14 = vector.load %arg3[%c0_7, %c0_8] : memref<8x2xf32, #tpu.memory_space<vmem>>, vector<8x2xf32>
    %15 = vector.extract_strided_slice %14 {offsets = [0, 0], sizes = [8, 1], strides = [1, 1]} : vector<8x2xf32> to vector<8x1xf32>
    %16 = vector.extract_strided_slice %14 {offsets = [0, 1], sizes = [8, 1], strides = [1, 1]} : vector<8x2xf32> to vector<8x1xf32>
    %cst_9 = arith.constant 9.99999974E-6 : f32
    %17 = vector.broadcast %cst_9 : f32 to vector<8x1xf32>
    %18 = arith.addf %13, %17 : vector<8x1xf32>
    %19 = math.rsqrt %18 : vector<8x1xf32>
    %20 = arith.mulf %15, %19 : vector<8x1xf32>
    %21 = arith.mulf %9, %20 : vector<8x1xf32>
    %22 = arith.subf %16, %21 : vector<8x1xf32>
    %23 = vector.broadcast %20 : vector<8x1xf32> to vector<8x384xf32>
    %24 = arith.mulf %2, %23 : vector<8x384xf32>
    %25 = vector.broadcast %22 : vector<8x1xf32> to vector<8x384xf32>
    %26 = arith.addf %24, %25 : vector<8x384xf32>
    %cst_10 = arith.constant 0.000000e+00 : f32
    %27 = vector.broadcast %cst_10 : f32 to vector<8x384xf32>
    %28 = arith.maximumf %26, %27 : vector<8x384xf32>
    %c0_11 = arith.constant 0 : index
    %c0_12 = arith.constant 0 : index
    %29 = vector.load %arg4[%c0_11, %c0_12] : memref<8x384xf32, #tpu.memory_space<vmem>>, vector<8x384xf32>
    tpu.vector_store %arg4[%c0_11, %c0_12], %28 {strides = array<i32>} : memref<8x384xf32, #tpu.memory_space<vmem>>, vector<8x384xf32>,
    return
  }
  func.func @transform_0(%arg0: i32) -> (i32, i32) {
    %c0_i32 = arith.constant 0 : i32
    %c0_i32_0 = arith.constant 0 : i32
    %c0_i32_1 = arith.constant 0 : i32
    return %c0_i32, %c0_i32_0 : i32, i32
  }
  func.func @transform_1(%arg0: i32) -> (i32, i32) {
    %c0_i32 = arith.constant 0 : i32
    %c0_i32_0 = arith.constant 0 : i32
    %c0_i32_1 = arith.constant 0 : i32
    return %c0_i32, %c0_i32_0 : i32, i32
  }
  func.func @transform_2(%arg0: i32) -> (i32, i32) {
    %c0_i32 = arith.constant 0 : i32
    %c0_i32_0 = arith.constant 0 : i32
    %c0_i32_1 = arith.constant 0 : i32
    return %c0_i32, %c0_i32_0 : i32, i32
  }
  func.func @transform_3(%arg0: i32) -> (i32, i32) {
    %c0_i32 = arith.constant 0 : i32
    %c0_i32_0 = arith.constant 0 : i32
    %c0_i32_1 = arith.constant 0 : i32
    return %c0_i32, %c0_i32_0 : i32, i32
  }
}

module attributes {stable_mosaic.version = 11 : i64} {
  func.func @kernel(%arg0: i32, %arg1: memref<8x128xf32, #tpu.memory_space<vmem>>, %arg2: memref<8x8xf32, #tpu.memory_space<vmem>>, %arg3: memref<8x2xf32, #tpu.memory_space<vmem>>, %arg4: memref<8x128xf32, #tpu.memory_space<vmem>>) attributes {dimension_semantics = [#tpu.dimension_semantics<arbitrary>], iteration_bounds = array<i64: 1>, scalar_prefetch = 0 : i64, scratch_operands = 0 : i64, tpu.core_type = #tpu.core_type<tc>, window_params = [{pipeline_mode = #tpu.pipeline_mode<synchronous>, transform_indices = @transform_0, window_bounds = array<i64: 8, 128>}, {pipeline_mode = #tpu.pipeline_mode<synchronous>, transform_indices = @transform_1, window_bounds = array<i64: 8, 8>}, {pipeline_mode = #tpu.pipeline_mode<synchronous>, transform_indices = @transform_2, window_bounds = array<i64: 8, 2>}, {pipeline_mode = #tpu.pipeline_mode<synchronous>, transform_indices = @transform_3, window_bounds = array<i64: 8, 128>}]} {
    %c0 = arith.constant 0 : index
    %c0_0 = arith.constant 0 : index
    %0 = vector.load %arg2[%c0, %c0_0] : memref<8x8xf32, #tpu.memory_space<vmem>>, vector<8x8xf32>
    %c0_1 = arith.constant 0 : index
    %c0_2 = arith.constant 0 : index
    %1 = vector.load %arg1[%c0_1, %c0_2] : memref<8x128xf32, #tpu.memory_space<vmem>>, vector<8x128xf32>
    %cst = arith.constant dense<0.000000e+00> : vector<8x128xf32>
    %2 = tpu.matmul %0, %1, %cst {dimension_numbers = #tpu.dot_dimension_numbers<[1], [0], [0], [1], [0, 0, 1, 1], [], []>} : vector<8x8xf32>, vector<8x128xf32>, vector<8x128xf32> -> vector<8x128xf32>
    %cst_3 = arith.constant dense<0.000000e+00> : vector<8xf32>
    %3 = vector.multi_reduction <add>, %2, %cst_3 [1] : vector<8x128xf32> to vector<8xf32>
    %4 = vector.shape_cast %3 : vector<8xf32> to vector<8x1xf32>
    %5 = arith.mulf %2, %2 : vector<8x128xf32>
    %cst_4 = arith.constant dense<0.000000e+00> : vector<8xf32>
    %6 = vector.multi_reduction <add>, %5, %cst_4 [1] : vector<8x128xf32> to vector<8xf32>
    %7 = vector.shape_cast %6 : vector<8xf32> to vector<8x1xf32>
    %cst_5 = arith.constant 1.250000e-02 : f32
    %8 = vector.broadcast %cst_5 : f32 to vector<8x1xf32>
    %9 = arith.mulf %4, %8 : vector<8x1xf32>
    %cst_6 = arith.constant 1.250000e-02 : f32
    %10 = vector.broadcast %cst_6 : f32 to vector<8x1xf32>
    %11 = arith.mulf %7, %10 : vector<8x1xf32>
    %12 = arith.mulf %9, %9 : vector<8x1xf32>
    %13 = arith.subf %11, %12 : vector<8x1xf32>
    %c0_7 = arith.constant 0 : index
    %c0_8 = arith.constant 0 : index
    %14 = vector.load %arg3[%c0_7, %c0_8] : memref<8x2xf32, #tpu.memory_space<vmem>>, vector<8x2xf32>
    %15 = vector.extract_strided_slice %14 {offsets = [0, 0], sizes = [8, 1], strides = [1, 1]} : vector<8x2xf32> to vector<8x1xf32>
    %16 = vector.extract_strided_slice %14 {offsets = [0, 1], sizes = [8, 1], strides = [1, 1]} : vector<8x2xf32> to vector<8x1xf32>
    %cst_9 = arith.constant 9.99999974E-6 : f32
    %17 = vector.broadcast %cst_9 : f32 to vector<8x1xf32>
    %18 = arith.addf %13, %17 : vector<8x1xf32>
    %19 = math.rsqrt %18 : vector<8x1xf32>
    %20 = arith.mulf %15, %19 : vector<8x1xf32>
    %21 = arith.mulf %9, %20 : vector<8x1xf32>
    %22 = arith.subf %16, %21 : vector<8x1xf32>
    %23 = vector.broadcast %20 : vector<8x1xf32> to vector<8x128xf32>
    %24 = arith.mulf %2, %23 : vector<8x128xf32>
    %25 = vector.broadcast %22 : vector<8x1xf32> to vector<8x128xf32>
    %26 = arith.addf %24, %25 : vector<8x128xf32>
    %cst_10 = arith.constant 0.000000e+00 : f32
    %27 = vector.broadcast %cst_10 : f32 to vector<8x128xf32>
    %28 = arith.maximumf %26, %27 : vector<8x128xf32>
    %c0_11 = arith.constant 0 : index
    %c0_12 = arith.constant 0 : index
    %29 = vector.load %arg4[%c0_11, %c0_12] : memref<8x128xf32, #tpu.memory_space<vmem>>, vector<8x128xf32>
    tpu.vector_store %arg4[%c0_11, %c0_12], %28 {strides = array<i32>} : memref<8x128xf32, #tpu.memory_space<vmem>>, vector<8x128xf32>,
    return
  }
  func.func @transform_0(%arg0: i32) -> (i32, i32) {
    %c0_i32 = arith.constant 0 : i32
    %c0_i32_0 = arith.constant 0 : i32
    %c0_i32_1 = arith.constant 0 : i32
    return %c0_i32, %c0_i32_0 : i32, i32
  }
  func.func @transform_1(%arg0: i32) -> (i32, i32) {
    %c0_i32 = arith.constant 0 : i32
    %c0_i32_0 = arith.constant 0 : i32
    %c0_i32_1 = arith.constant 0 : i32
    return %c0_i32, %c0_i32_0 : i32, i32
  }
  func.func @transform_2(%arg0: i32) -> (i32, i32) {
    %c0_i32 = arith.constant 0 : i32
    %c0_i32_0 = arith.constant 0 : i32
    %c0_i32_1 = arith.constant 0 : i32
    return %c0_i32, %c0_i32_0 : i32, i32
  }
  func.func @transform_3(%arg0: i32) -> (i32, i32) {
    %c0_i32 = arith.constant 0 : i32
    %c0_i32_0 = arith.constant 0 : i32
    %c0_i32_1 = arith.constant 0 : i32
    return %c0_i32, %c0_i32_0 : i32, i32
  }
}

module attributes {stable_mosaic.version = 11 : i64} {
  func.func @kernel(%arg0: i32, %arg1: memref<8x512xf32, #tpu.memory_space<vmem>>, %arg2: memref<8x512xf32, #tpu.memory_space<vmem>>, %arg3: memref<8x8xf32, #tpu.memory_space<vmem>>, %arg4: memref<8x8xf32, #tpu.memory_space<vmem>>, %arg5: memref<8x2xf32, #tpu.memory_space<vmem>>, %arg6: memref<8x512xf32, #tpu.memory_space<vmem>>) attributes {dimension_semantics = [#tpu.dimension_semantics<arbitrary>], iteration_bounds = array<i64: 1>, scalar_prefetch = 0 : i64, scratch_operands = 0 : i64, tpu.core_type = #tpu.core_type<tc>, window_params = [{pipeline_mode = #tpu.pipeline_mode<synchronous>, transform_indices = @transform_0, window_bounds = array<i64: 8, 512>}, {pipeline_mode = #tpu.pipeline_mode<synchronous>, transform_indices = @transform_1, window_bounds = array<i64: 8, 512>}, {pipeline_mode = #tpu.pipeline_mode<synchronous>, transform_indices = @transform_2, window_bounds = array<i64: 8, 8>}, {pipeline_mode = #tpu.pipeline_mode<synchronous>, transform_indices = @transform_3, window_bounds = array<i64: 8, 8>}, {pipeline_mode = #tpu.pipeline_mode<synchronous>, transform_indices = @transform_4, window_bounds = array<i64: 8, 2>}, {pipeline_mode = #tpu.pipeline_mode<synchronous>, transform_indices = @transform_5, window_bounds = array<i64: 8, 512>}]} {
    %c0 = arith.constant 0 : index
    %c0_0 = arith.constant 0 : index
    %0 = vector.load %arg3[%c0, %c0_0] : memref<8x8xf32, #tpu.memory_space<vmem>>, vector<8x8xf32>
    %c0_1 = arith.constant 0 : index
    %c0_2 = arith.constant 0 : index
    %1 = vector.load %arg1[%c0_1, %c0_2] : memref<8x512xf32, #tpu.memory_space<vmem>>, vector<8x512xf32>
    %cst = arith.constant dense<0.000000e+00> : vector<8x512xf32>
    %2 = tpu.matmul %0, %1, %cst {dimension_numbers = #tpu.dot_dimension_numbers<[1], [0], [0], [1], [0, 0, 1, 1], [], []>} : vector<8x8xf32>, vector<8x512xf32>, vector<8x512xf32> -> vector<8x512xf32>
    %c0_3 = arith.constant 0 : index
    %c0_4 = arith.constant 0 : index
    %3 = vector.load %arg4[%c0_3, %c0_4] : memref<8x8xf32, #tpu.memory_space<vmem>>, vector<8x8xf32>
    %c0_5 = arith.constant 0 : index
    %c0_6 = arith.constant 0 : index
    %4 = vector.load %arg2[%c0_5, %c0_6] : memref<8x512xf32, #tpu.memory_space<vmem>>, vector<8x512xf32>
    %cst_7 = arith.constant dense<0.000000e+00> : vector<8x512xf32>
    %5 = tpu.matmul %3, %4, %cst_7 {dimension_numbers = #tpu.dot_dimension_numbers<[1], [0], [0], [1], [0, 0, 1, 1], [], []>} : vector<8x8xf32>, vector<8x512xf32>, vector<8x512xf32> -> vector<8x512xf32>
    %6 = arith.addf %2, %5 : vector<8x512xf32>
    %cst_8 = arith.constant dense<0.000000e+00> : vector<8xf32>
    %7 = vector.multi_reduction <add>, %6, %cst_8 [1] : vector<8x512xf32> to vector<8xf32>
    %8 = vector.shape_cast %7 : vector<8xf32> to vector<8x1xf32>
    %9 = arith.mulf %6, %6 : vector<8x512xf32>
    %cst_9 = arith.constant dense<0.000000e+00> : vector<8xf32>
    %10 = vector.multi_reduction <add>, %9, %cst_9 [1] : vector<8x512xf32> to vector<8xf32>
    %11 = vector.shape_cast %10 : vector<8xf32> to vector<8x1xf32>
    %cst_10 = arith.constant 0.001953125 : f32
    %12 = vector.broadcast %cst_10 : f32 to vector<8x1xf32>
    %13 = arith.mulf %8, %12 : vector<8x1xf32>
    %cst_11 = arith.constant 0.001953125 : f32
    %14 = vector.broadcast %cst_11 : f32 to vector<8x1xf32>
    %15 = arith.mulf %11, %14 : vector<8x1xf32>
    %16 = arith.mulf %13, %13 : vector<8x1xf32>
    %17 = arith.subf %15, %16 : vector<8x1xf32>
    %c0_12 = arith.constant 0 : index
    %c0_13 = arith.constant 0 : index
    %18 = vector.load %arg5[%c0_12, %c0_13] : memref<8x2xf32, #tpu.memory_space<vmem>>, vector<8x2xf32>
    %19 = vector.extract_strided_slice %18 {offsets = [0, 0], sizes = [8, 1], strides = [1, 1]} : vector<8x2xf32> to vector<8x1xf32>
    %20 = vector.extract_strided_slice %18 {offsets = [0, 1], sizes = [8, 1], strides = [1, 1]} : vector<8x2xf32> to vector<8x1xf32>
    %cst_14 = arith.constant 9.99999974E-6 : f32
    %21 = vector.broadcast %cst_14 : f32 to vector<8x1xf32>
    %22 = arith.addf %17, %21 : vector<8x1xf32>
    %23 = math.rsqrt %22 : vector<8x1xf32>
    %24 = arith.mulf %19, %23 : vector<8x1xf32>
    %25 = arith.mulf %13, %24 : vector<8x1xf32>
    %26 = arith.subf %20, %25 : vector<8x1xf32>
    %27 = vector.broadcast %24 : vector<8x1xf32> to vector<8x512xf32>
    %28 = arith.mulf %6, %27 : vector<8x512xf32>
    %29 = vector.broadcast %26 : vector<8x1xf32> to vector<8x512xf32>
    %30 = arith.addf %28, %29 : vector<8x512xf32>
    %cst_15 = arith.constant 0.000000e+00 : f32
    %31 = vector.broadcast %cst_15 : f32 to vector<8x512xf32>
    %32 = arith.maximumf %30, %31 : vector<8x512xf32>
    %c0_16 = arith.constant 0 : index
    %c0_17 = arith.constant 0 : index
    %33 = vector.load %arg6[%c0_16, %c0_17] : memref<8x512xf32, #tpu.memory_space<vmem>>, vector<8x512xf32>
    tpu.vector_store %arg6[%c0_16, %c0_17], %32 {strides = array<i32>} : memref<8x512xf32, #tpu.memory_space<vmem>>, vector<8x512xf32>,
    return
  }
  func.func @transform_0(%arg0: i32) -> (i32, i32) {
    %c0_i32 = arith.constant 0 : i32
    %c0_i32_0 = arith.constant 0 : i32
    %c0_i32_1 = arith.constant 0 : i32
    return %c0_i32, %c0_i32_0 : i32, i32
  }
  func.func @transform_1(%arg0: i32) -> (i32, i32) {
    %c0_i32 = arith.constant 0 : i32
    %c0_i32_0 = arith.constant 0 : i32
    %c0_i32_1 = arith.constant 0 : i32
    return %c0_i32, %c0_i32_0 : i32, i32
  }
  func.func @transform_2(%arg0: i32) -> (i32, i32) {
    %c0_i32 = arith.constant 0 : i32
    %c0_i32_0 = arith.constant 0 : i32
    %c0_i32_1 = arith.constant 0 : i32
    return %c0_i32, %c0_i32_0 : i32, i32
  }
  func.func @transform_3(%arg0: i32) -> (i32, i32) {
    %c0_i32 = arith.constant 0 : i32
    %c0_i32_0 = arith.constant 0 : i32
    %c0_i32_1 = arith.constant 0 : i32
    return %c0_i32, %c0_i32_0 : i32, i32
  }
  func.func @transform_4(%arg0: i32) -> (i32, i32) {
    %c0_i32 = arith.constant 0 : i32
    %c0_i32_0 = arith.constant 0 : i32
    %c0_i32_1 = arith.constant 0 : i32
    return %c0_i32, %c0_i32_0 : i32, i32
  }
  func.func @transform_5(%arg0: i32) -> (i32, i32) {
    %c0_i32 = arith.constant 0 : i32
    %c0_i32_0 = arith.constant 0 : i32
    %c0_i32_1 = arith.constant 0 : i32
    return %c0_i32, %c0_i32_0 : i32, i32
  }
}

module attributes {stable_mosaic.version = 11 : i64} {
  func.func @kernel(%arg0: i32, %arg1: memref<8x512xf32, #tpu.memory_space<vmem>>, %arg2: memref<8x8xf32, #tpu.memory_space<vmem>>, %arg3: memref<8x2xf32, #tpu.memory_space<vmem>>, %arg4: memref<8x512xf32, #tpu.memory_space<vmem>>) attributes {dimension_semantics = [#tpu.dimension_semantics<arbitrary>], iteration_bounds = array<i64: 1>, scalar_prefetch = 0 : i64, scratch_operands = 0 : i64, tpu.core_type = #tpu.core_type<tc>, window_params = [{pipeline_mode = #tpu.pipeline_mode<synchronous>, transform_indices = @transform_0, window_bounds = array<i64: 8, 512>}, {pipeline_mode = #tpu.pipeline_mode<synchronous>, transform_indices = @transform_1, window_bounds = array<i64: 8, 8>}, {pipeline_mode = #tpu.pipeline_mode<synchronous>, transform_indices = @transform_2, window_bounds = array<i64: 8, 2>}, {pipeline_mode = #tpu.pipeline_mode<synchronous>, transform_indices = @transform_3, window_bounds = array<i64: 8, 512>}]} {
    %c0 = arith.constant 0 : index
    %c0_0 = arith.constant 0 : index
    %0 = vector.load %arg2[%c0, %c0_0] : memref<8x8xf32, #tpu.memory_space<vmem>>, vector<8x8xf32>
    %c0_1 = arith.constant 0 : index
    %c0_2 = arith.constant 0 : index
    %1 = vector.load %arg1[%c0_1, %c0_2] : memref<8x512xf32, #tpu.memory_space<vmem>>, vector<8x512xf32>
    %cst = arith.constant dense<0.000000e+00> : vector<8x512xf32>
    %2 = tpu.matmul %0, %1, %cst {dimension_numbers = #tpu.dot_dimension_numbers<[1], [0], [0], [1], [0, 0, 1, 1], [], []>} : vector<8x8xf32>, vector<8x512xf32>, vector<8x512xf32> -> vector<8x512xf32>
    %cst_3 = arith.constant dense<0.000000e+00> : vector<8xf32>
    %3 = vector.multi_reduction <add>, %2, %cst_3 [1] : vector<8x512xf32> to vector<8xf32>
    %4 = vector.shape_cast %3 : vector<8xf32> to vector<8x1xf32>
    %5 = arith.mulf %2, %2 : vector<8x512xf32>
    %cst_4 = arith.constant dense<0.000000e+00> : vector<8xf32>
    %6 = vector.multi_reduction <add>, %5, %cst_4 [1] : vector<8x512xf32> to vector<8xf32>
    %7 = vector.shape_cast %6 : vector<8xf32> to vector<8x1xf32>
    %cst_5 = arith.constant 0.001953125 : f32
    %8 = vector.broadcast %cst_5 : f32 to vector<8x1xf32>
    %9 = arith.mulf %4, %8 : vector<8x1xf32>
    %cst_6 = arith.constant 0.001953125 : f32
    %10 = vector.broadcast %cst_6 : f32 to vector<8x1xf32>
    %11 = arith.mulf %7, %10 : vector<8x1xf32>
    %12 = arith.mulf %9, %9 : vector<8x1xf32>
    %13 = arith.subf %11, %12 : vector<8x1xf32>
    %c0_7 = arith.constant 0 : index
    %c0_8 = arith.constant 0 : index
    %14 = vector.load %arg3[%c0_7, %c0_8] : memref<8x2xf32, #tpu.memory_space<vmem>>, vector<8x2xf32>
    %15 = vector.extract_strided_slice %14 {offsets = [0, 0], sizes = [8, 1], strides = [1, 1]} : vector<8x2xf32> to vector<8x1xf32>
    %16 = vector.extract_strided_slice %14 {offsets = [0, 1], sizes = [8, 1], strides = [1, 1]} : vector<8x2xf32> to vector<8x1xf32>
    %cst_9 = arith.constant 9.99999974E-6 : f32
    %17 = vector.broadcast %cst_9 : f32 to vector<8x1xf32>
    %18 = arith.addf %13, %17 : vector<8x1xf32>
    %19 = math.rsqrt %18 : vector<8x1xf32>
    %20 = arith.mulf %15, %19 : vector<8x1xf32>
    %21 = arith.mulf %9, %20 : vector<8x1xf32>
    %22 = arith.subf %16, %21 : vector<8x1xf32>
    %23 = vector.broadcast %20 : vector<8x1xf32> to vector<8x512xf32>
    %24 = arith.mulf %2, %23 : vector<8x512xf32>
    %25 = vector.broadcast %22 : vector<8x1xf32> to vector<8x512xf32>
    %26 = arith.addf %24, %25 : vector<8x512xf32>
    %cst_10 = arith.constant 0.000000e+00 : f32
    %27 = vector.broadcast %cst_10 : f32 to vector<8x512xf32>
    %28 = arith.maximumf %26, %27 : vector<8x512xf32>
    %c0_11 = arith.constant 0 : index
    %c0_12 = arith.constant 0 : index
    %29 = vector.load %arg4[%c0_11, %c0_12] : memref<8x512xf32, #tpu.memory_space<vmem>>, vector<8x512xf32>
    tpu.vector_store %arg4[%c0_11, %c0_12], %28 {strides = array<i32>} : memref<8x512xf32, #tpu.memory_space<vmem>>, vector<8x512xf32>,
    return
  }
  func.func @transform_0(%arg0: i32) -> (i32, i32) {
    %c0_i32 = arith.constant 0 : i32
    %c0_i32_0 = arith.constant 0 : i32
    %c0_i32_1 = arith.constant 0 : i32
    return %c0_i32, %c0_i32_0 : i32, i32
  }
  func.func @transform_1(%arg0: i32) -> (i32, i32) {
    %c0_i32 = arith.constant 0 : i32
    %c0_i32_0 = arith.constant 0 : i32
    %c0_i32_1 = arith.constant 0 : i32
    return %c0_i32, %c0_i32_0 : i32, i32
  }
  func.func @transform_2(%arg0: i32) -> (i32, i32) {
    %c0_i32 = arith.constant 0 : i32
    %c0_i32_0 = arith.constant 0 : i32
    %c0_i32_1 = arith.constant 0 : i32
    return %c0_i32, %c0_i32_0 : i32, i32
  }
  func.func @transform_3(%arg0: i32) -> (i32, i32) {
    %c0_i32 = arith.constant 0 : i32
    %c0_i32_0 = arith.constant 0 : i32
    %c0_i32_1 = arith.constant 0 : i32
    return %c0_i32, %c0_i32_0 : i32, i32
  }
}

</mosaic_0001>

<bundles_post_ra>
// kernel: ffc_bn_act_forward.6
= control target key start
LH: loop header
LB: loop body
LE: loop exit
PB: predicated region body
PF: predicated region fallthrough
CT: control target
= control target key end

     0   :  { %v248_v2 = vmov 0.0   ;;  %vm19_vm0 = vcmask 64512   ;;  %vm165_vm1 = vcmask 1043456   ;;  %v249_v28 = vmov 0   ;;  %s251_s22 = smov 1   ;;  %s304_s0 = inlined_call_operand.vmem [shape: f32[8,512], index: 0, kind: input, shape index: {}]   ;;  %s305_s1 = inlined_call_operand.vmem [shape: f32[4,8], index: 1, kind: input, shape index: {}]   ;;  %s306_s2 = inlined_call_operand.vmem [shape: f32[4,2], index: 2, kind: input, shape index: {}]   ;;  %s307_s3 = inlined_call_operand.vmem [shape: f32[4,512], index: 3, kind: output, shape index: {}]  }
   0x1   :  { %v16_v0 = vld [vmem:[%s304_s0 + $0x8] sm:$0xff]  ;;  %v15_v1 = vld [vmem:[%s304_s0] sm:$0xff]  ;;  %87 = vmatprep.mubr.f32.mxu0 %v248_v2  ;;  %158 = vmatprep.mubr.f32.mxu1 %v248_v2  ;;  %v18_v4 = vld [vmem:[%s304_s0 + $0x18] sm:$0xff]  ;;  %v250_v36 = vmov 1  }
   0x2   :  { %v14_v3 = vld [vmem:[%s305_s1] sm:$0xf]  ;;  %23 = vmatprep.subr.mxu0 %v16_v0  ;;  %v17_v5 = vld [vmem:[%s304_s0 + $0x10] sm:$0xff]  ;;  %94 = vmatprep.subr.mxu1 %v18_v4 }
   0x3   :  { %24 = vmatpush1.msra.mxu0 %v15_v1  ;;  %95 = vmatpush1.msra.mxu1 %v17_v5  ;;  %v192_v37 = vld [vmem:[%s306_s2] sm:$0xf] }
   0x4   :  { %238 = vmatmul.mubr.msk.f32.vlgmr.msra.gmra.mrb[0].mxu0 %vm19_vm0, %v14_v3  ;;  %239 = vmatmul.mubr.msk.f32.vlgmr.msra.gmra.mrb[0].mxu1 %vm19_vm0, %v14_v3 }
   0x5   :  { %244 = vset.pattern.permute.xlu1 %v249_v28  ;;  %245 = vset.pattern.permute.xlu0 %v250_v36 }
  0xd7   :  { %v89_v6 = vpop.f32.mrb[0].mxu0  ;;  %v160_v10 = vpop.f32.mrb[0].mxu1 }
  0xd8   :  { %v166_v7 = vsel %vm165_vm1, %v89_v6, 0.0  ;;  %v175_v8 = vmul.f32 %v89_v6, %v89_v6  ;;  %v91_v9 = vpop.f32.mrb[1].mxu0  ;;  %v177_v13 = vmul.f32 %v160_v10, %v160_v10  ;;  %v162_v14 = vpop.f32.mrb[1].mxu1  ;;  %v169_v15 = vsel %vm165_vm1, %v160_v10, 0.0 }
  0xd9   :  { %v167_v11 = vsel %vm165_vm1, %v91_v9, 0.0  ;;  %v176_v12 = vmul.f32 %v91_v9, %v91_v9  ;;  %v178_v19 = vmul.f32 %v162_v14, %v162_v14  ;;  %v171_v23 = vsel %vm165_vm1, %v162_v14, 0.0 }
  0xda   :  { %v179_v16 = vsel %vm165_vm1, %v175_v8, 0.0  ;;  %v168_v17 = vadd.f32 %v167_v11, %v166_v7  ;;  %v182_v20 = vsel %vm165_vm1, %v177_v13, 0.0 }
  0xdb   :  { %v180_v18 = vsel %vm165_vm1, %v176_v12, 0.0  ;;  %v184_v26 = vsel %vm165_vm1, %v178_v19, 0.0 }
  0xdc   :  { %v181_v21 = vadd.f32 %v180_v18, %v179_v16  ;;  %v170_v22 = vadd.f32 %v169_v15, %v168_v17 }
  0xde   :  { %v172_v24 = vadd.f32 %v171_v23, %v170_v22  ;;  %v183_v25 = vadd.f32 %v182_v20, %v181_v21 }
  0xe0   :  { %173 = vadd.xlane.f32.xlu0 %v172_v24  ;;  %v185_v27 = vadd.f32 %v184_v26, %v183_v25 }
  0xe4   :  { %186 = vadd.xlane.f32.xlu0 %v185_v27 }
 0x16d   :  { %v174_v29 = vpop.xlane.xlu0 %173 }
 0x16e   :  { %v188_v30 = vmul.f32 0.001953125, %v174_v29 }
 0x170   :  { %v190_v32 = vmul.f32 %v188_v30, %v188_v30 }
 0x171   :  { %v187_v31 = vpop.xlane.xlu0 %186 }
 0x172   :  { %v189_v33 = vmul.f32 0.001953125, %v187_v31 }
 0x174   :  { %v191_v34 = vsub.f32 %v189_v33, %v190_v32 }
 0x176   :  { %v193_v35 = vadd.f32 1e-05, %v191_v34 }
 0x178   :  { %246 = vrsqrt.f32 %v193_v35 }
 0x182   :  { %v247_v38 = vpop.eup %246 }
 0x183   :  { %v195_v39 = vmul.f32 %v247_v38, %v192_v37 }
 0x185   :  { %v196_v40 = vmul.f32 %v195_v39, %v188_v30 }
 0x187   :  { %198 = vrot.lane.b32.xlu1 %v196_v40, %s251_s22 }
 0x18b   :  { %204 = vperm.xlu1 %244, %v195_v39  }
 0x1f9   :  { %v199_v41 = vpop.permute.xlu1 %198 }
 0x1fa   :  { %v201_v42 = vsub.f32 %v192_v37, %v199_v41 }
 0x1fc   :  { %213 = vperm.xlu0 %245, %v201_v42  }
 0x20a   :  { %v205_v43 = vpop.permute.xlu1 %204 }
 0x20b   :  { %v207_v44 = vmul.f32 %v205_v43, %v89_v6  ;;  %v208_v45 = vmul.f32 %v205_v43, %v91_v9  ;;  %v209_v46 = vmul.f32 %v205_v43, %v160_v10  ;;  %v210_v47 = vmul.f32 %v205_v43, %v162_v14 }
 0x27b   :  { %v214_v48 = vpop.permute.xlu0 %213 }
 0x27c   :  { %v216_v49 = vadd.f32 %v214_v48, %v207_v44  ;;  %v217_v50 = vadd.f32 %v214_v48, %v208_v45  ;;  %v218_v51 = vadd.f32 %v214_v48, %v209_v46  ;;  %v219_v52 = vadd.f32 %v214_v48, %v210_v47 }
 0x27e   :  { %v220_v53 = vmax.f32 %v216_v49, 0.0  ;;  %v221_v54 = vmax.f32 %v217_v50, 0.0  ;;  %v222_v55 = vmax.f32 %v218_v51, 0.0  ;;  %v223_v56 = vmax.f32 %v219_v52, 0.0 }
 0x280   :  { %v228_v57 = vcombine.low %v220_v53, %v221_v54  ;;  %v229_v58 = vcombine.low %v222_v55, %v223_v56 }
 0x282   :  { %232 = vst [vmem:[%s307_s3] sm:$0xff] %v228_v57  ;;  %233 = vst [vmem:[%s307_s3 + $0x8] sm:$0xff] %v229_v58 }

// kernel: ffc_bn_act_forward.7
= control target key start
LH: loop header
LB: loop body
LE: loop exit
PB: predicated region body
PF: predicated region fallthrough
CT: control target
= control target key end

     0   :  { %v232_v2 = vmov 0.0   ;;  %vm18_vm0 = vcmask 64512   ;;  %vm233_vm1 = vmmov 0   ;;  %v234_v16 = vmov 0   ;;  %s236_s20 = smov 1   ;;  %s281_s0 = inlined_call_operand.vmem [shape: f32[8,384], index: 0, kind: input, shape index: {}]   ;;  %s282_s1 = inlined_call_operand.vmem [shape: f32[8,8], index: 1, kind: input, shape index: {}]   ;;  %s283_s2 = inlined_call_operand.vmem [shape: f32[8,2], index: 2, kind: input, shape index: {}]   ;;  %s284_s3 = inlined_call_operand.vmem [shape: f32[8,384], index: 3, kind: output, shape index: {}]  }
   0x1   :  { %v16_v0 = vld [vmem:[%s281_s0 + $0x8] sm:$0xff]  ;;  %v15_v1 = vld [vmem:[%s281_s0] sm:$0xff]  ;;  %86 = vmatprep.mubr.f32.mxu0 %v232_v2  ;;  %218 = vmatprep.subr.mxu1 %v232_v2  ;;  %v17_v4 = vld [vmem:[%s281_s0 + $0x10] sm:$0xff]  ;;  %v235_v24 = vmov 1  }
   0x2   :  { %v14_v3 = vld [vmem:[%s282_s1] sm:$0xff]  ;;  %22 = vmatprep.subr.mxu0 %v16_v0  ;;  %220 = vmatprep.mubr.msk.f32.mxu1 %vm233_vm1, %v232_v2 }
   0x3   :  { %23 = vmatpush1.msra.mxu0 %v15_v1  ;;  %219 = vmatpush3.msra.mxu1 %v17_v4  ;;  %v178_v25 = vld [vmem:[%s283_s2] sm:$0xff] }
   0x4   :  { %214 = vmatmul.mubr.msk.f32.vlgmr.msra.gmra.mrb[0].mxu0 %vm18_vm0, %v14_v3  ;;  %221 = vmatmul.mubr.msk.f32.vlgmr.msra.gmra.mrb[0].mxu1 %vm18_vm0, %v14_v3 }
   0x5   :  { %228 = vset.pattern.permute.xlu1 %v234_v16  ;;  %229 = vset.pattern.permute.xlu0 %v235_v24 }
  0xd7   :  { %v88_v5 = vpop.f32.mrb[0].mxu0  ;;  %v159_v6 = vpop.f32.mrb[0].mxu1 }
  0xd8   :  { %v167_v7 = vmul.f32 %v88_v5, %v88_v5  ;;  %v90_v8 = vpop.f32.mrb[1].mxu0  ;;  %v222_v9 = vpop.f32.mrb[1].mxu1  ;;  %v169_v12 = vmul.f32 %v159_v6, %v159_v6 }
  0xd9   :  { %v163_v10 = vadd.f32 %v90_v8, %v88_v5  ;;  %v168_v11 = vmul.f32 %v90_v8, %v90_v8 }
  0xdb   :  { %v164_v13 = vadd.f32 %v163_v10, %v159_v6  ;;  %v170_v14 = vadd.f32 %v168_v11, %v167_v7 }
  0xdd   :  { %165 = vadd.xlane.f32.xlu0 %v164_v13  ;;  %v171_v15 = vadd.f32 %v170_v14, %v169_v12 }
  0xe1   :  { %172 = vadd.xlane.f32.xlu0 %v171_v15 }
 0x16a   :  { %v166_v17 = vpop.xlane.xlu0 %165 }
 0x16b   :  { %v174_v18 = vmul.f32 0.0034722222, %v166_v17 }
 0x16d   :  { %v176_v20 = vmul.f32 %v174_v18, %v174_v18 }
 0x16e   :  { %v173_v19 = vpop.xlane.xlu0 %172 }
 0x16f   :  { %v175_v21 = vmul.f32 0.0034722222, %v173_v19 }
 0x171   :  { %v177_v22 = vsub.f32 %v175_v21, %v176_v20 }
 0x173   :  { %v179_v23 = vadd.f32 1e-05, %v177_v22 }
 0x175   :  { %230 = vrsqrt.f32 %v179_v23 }
 0x17f   :  { %v231_v26 = vpop.eup %230 }
 0x180   :  { %v181_v27 = vmul.f32 %v231_v26, %v178_v25 }
 0x182   :  { %v182_v28 = vmul.f32 %v181_v27, %v174_v18 }
 0x184   :  { %184 = vrot.lane.b32.xlu1 %v182_v28, %s236_s20 }
 0x188   :  { %190 = vperm.xlu1 %228, %v181_v27  }
 0x1f6   :  { %v185_v29 = vpop.permute.xlu1 %184 }
 0x1f7   :  { %v187_v30 = vsub.f32 %v178_v25, %v185_v29 }
 0x1f9   :  { %198 = vperm.xlu0 %229, %v187_v30  }
 0x207   :  { %v191_v31 = vpop.permute.xlu1 %190 }
 0x208   :  { %v193_v32 = vmul.f32 %v191_v31, %v88_v5  ;;  %v194_v33 = vmul.f32 %v191_v31, %v90_v8  ;;  %v195_v34 = vmul.f32 %v191_v31, %v159_v6 }
 0x278   :  { %v199_v35 = vpop.permute.xlu0 %198 }
 0x279   :  { %v201_v36 = vadd.f32 %v199_v35, %v193_v32  ;;  %v202_v37 = vadd.f32 %v199_v35, %v194_v33  ;;  %v203_v38 = vadd.f32 %v199_v35, %v195_v34 }
 0x27b   :  { %v204_v39 = vmax.f32 %v201_v36, 0.0  ;;  %v205_v40 = vmax.f32 %v202_v37, 0.0  ;;  %v206_v41 = vmax.f32 %v203_v38, 0.0 }
 0x27d   :  { %207 = vst [vmem:[%s284_s3] sm:$0xff] %v204_v39  ;;  %208 = vst [vmem:[%s284_s3 + $0x8] sm:$0xff] %v205_v40 }
 0x27e   :  { %209 = vst [vmem:[%s284_s3 + $0x10] sm:$0xff] %v206_v41 }

// kernel: reverse.0
= control target key start
LH: loop header
LB: loop body
LE: loop exit
PB: predicated region body
PF: predicated region fallthrough
CT: control target
= control target key end

     0   :  { %v71_v3 = vlaneseq  ;;  %v64_v9 = vld [vmem:[#allocation0 + $0x7] ss:$-1 sm:$0xff]  ;;  %v78_v12 = vld [vmem:[#allocation0 + $0x17] ss:$-1 sm:$0xff]  ;;  %s329_s0 = inlined_call_operand.vmem [shape: f32[4,2,16,7], index: 0, kind: input, shape index: {}]   ;;  %s330_s1 = inlined_call_operand.vmem [shape: f32[4,2,16,7], index: 1, kind: output, shape index: {}]  }
   0x1   :  { %v44_v0 = vld [vmem:[%s329_s0] sm:$0xff]  ;;  %v46_v1 = vld [vmem:[%s329_s0 + $0x8] sm:$0xff]  ;;  %v48_v2 = vld [vmem:[%s329_s0 + $0x10] sm:$0xff]  ;;  %v65_v10 = vrot.slane %v64_v9, 1  ;;  %v79_v14 = vrot.slane %v78_v12, 1 }
   0x2   :  { %45 = vst [vmem:[#allocation0 + $0x8] sm:$0xff] %v44_v0  ;;  %47 = vst [vmem:[#allocation0 + $0x18] sm:$0xff] %v46_v1  ;;  %v50_v4 = vld [vmem:[%s329_s0 + $0x18] sm:$0xff]  ;;  %v52_v5 = vld [vmem:[%s329_s0 + $0x20] sm:$0xff]  ;;  %v72_v11 = vshrl.u32 %v71_v3, 7 }
   0x3   :  { %49 = vst [vmem:[#allocation0 + $0x28] sm:$0xff] %v48_v2  ;;  %v54_v6 = vld [vmem:[%s329_s0 + $0x28] sm:$0xff]  ;;  %51 = vst [vmem:[#allocation0 + $0x38] sm:$0xff] %v50_v4  ;;  %v56_v7 = vld [vmem:[%s329_s0 + $0x30] sm:$0xff] }
   0x4   :  { %53 = vst [vmem:[#allocation0 + $0x48] sm:$0xff] %v52_v5  ;;  %55 = vst [vmem:[#allocation0 + $0x58] sm:$0xff] %v54_v6  ;;  %v58_v8 = vld [vmem:[%s329_s0 + $0x38] sm:$0xff]  ;;  %v92_v13 = vld [vmem:[#allocation0 + $0x27] ss:$-1 sm:$0xff]  ;;  %vm73_vm0 = vcmp.lt.s32.totalorder %v72_v11, 7 }
   0x5   :  { %57 = vst [vmem:[#allocation0 + $0x68] sm:$0xff] %v56_v7  ;;  %59 = vst [vmem:[#allocation0 + $0x78] sm:$0xff] %v58_v8  ;;  %v93_v15 = vrot.slane %v92_v13, 1  ;;  %v106_v16 = vld [vmem:[#allocation0 + $0x37] ss:$-1 sm:$0xff] }
   0x6   :  { %66 = vst [vmem:[#allocation1] sm:$0xff] %v65_v10  ;;  %v107_v17 = vrot.slane %v106_v16, 1  ;;  %v120_v18 = vld [vmem:[#allocation0 + $0x47] ss:$-1 sm:$0xff]  ;;  %v134_v19 = vld [vmem:[#allocation0 + $0x57] ss:$-1 sm:$0xff] }
   0x7   :  { %80 = vst [vmem:[#allocation1 + $0x8] sm:$0xff] %v79_v14  ;;  %94 = vst [vmem:[#allocation1 + $0x10] sm:$0xff] %v93_v15  ;;  %v121_v20 = vrot.slane %v120_v18, 1  ;;  %v135_v21 = vrot.slane %v134_v19, 1  ;;  %v148_v22 = vld [vmem:[#allocation0 + $0x67] ss:$-1 sm:$0xff] }
   0x8   :  { %v162_v23 = vld [vmem:[#allocation0 + $0x77] ss:$-1 sm:$0xff]  ;;  %108 = vst [vmem:[#allocation1 + $0x18] sm:$0xff] %v107_v17  ;;  %v149_v24 = vrot.slane %v148_v22, 1 }
   0x9   :  { %v163_v25 = vrot.slane %v162_v23, 1  ;;  %v69_v26 = vld [vmem:[#allocation0 + $0xf] ss:$-1 sm:$0xff]  ;;  %v83_v27 = vld [vmem:[#allocation0 + $0x1f] ss:$-1 sm:$0xff]  ;;  %122 = vst [vmem:[#allocation1 + $0x20] sm:$0xff] %v121_v20 }
   0xa   :  { %v97_v28 = vld [vmem:[#allocation0 + $0x2f] ss:$-1 sm:$0xff]  ;;  %136 = vst [vmem:[#allocation1 + $0x28] sm:$0xff] %v135_v21  ;;  %v70_v29 = vrot.slane %v69_v26, 1  ;;  %v84_v30 = vrot.slane %v83_v27, 1  ;;  %150 = vst [vmem:[#allocation1 + $0x30] sm:$0xff] %v149_v24 }
   0xb   :  { %v98_v31 = vrot.slane %v97_v28, 1  ;;  %v111_v32 = vld [vmem:[#allocation0 + $0x3f] ss:$-1 sm:$0xff]  ;;  %164 = vst [vmem:[#allocation1 + $0x38] sm:$0xff] %v163_v25  ;;  %v125_v34 = vld [vmem:[#allocation0 + $0x4f] ss:$-1 sm:$0xff] }
   0xc   :  { %v112_v33 = vrot.slane %v111_v32, 1  ;;  %v139_v35 = vld [vmem:[#allocation0 + $0x5f] ss:$-1 sm:$0xff]  ;;  %74 = vst.msk [vmem:[#allocation1] sm:$0xff] %vm73_vm0, %v70_v29  ;;  %88 = vst.msk [vmem:[#allocation1 + $0x8] sm:$0xff] %vm73_vm0, %v84_v30  ;;  %v126_v36 = vrot.slane %v125_v34, 1 }
   0xd   :  { %102 = vst.msk [vmem:[#allocation1 + $0x10] sm:$0xff] %vm73_vm0, %v98_v31  ;;  %v140_v37 = vrot.slane %v139_v35, 1  ;;  %v153_v38 = vld [vmem:[#allocation0 + $0x6f] ss:$-1 sm:$0xff]  ;;  %v167_v39 = vld [vmem:[#allocation0 + $0x7f] ss:$-1 sm:$0xff] }
   0xe   :  { %116 = vst.msk [vmem:[#allocation1 + $0x18] sm:$0xff] %vm73_vm0, %v112_v33  ;;  %v154_v40 = vrot.slane %v153_v38, 1  ;;  %v168_v41 = vrot.slane %v167_v39, 1  ;;  %130 = vst.msk [vmem:[#allocation1 + $0x20] sm:$0xff] %vm73_vm0, %v126_v36 }
   0xf   :  { %144 = vst.msk [vmem:[#allocation1 + $0x28] sm:$0xff] %vm73_vm0, %v140_v37 }
  0x10   :  { %158 = vst.msk [vmem:[#allocation1 + $0x30] sm:$0xff] %vm73_vm0, %v154_v40  ;;  %172 = vst.msk [vmem:[#allocation1 + $0x38] sm:$0xff] %vm73_vm0, %v168_v41 }
  0x13   :  { %v214_v42 = vld [vmem:[#allocation1] sm:$0xff]  ;;  %v216_v43 = vld [vmem:[#allocation1 + $0x8] sm:$0xff] }
  0x14   :  { %v218_v44 = vld [vmem:[#allocation1 + $0x10] sm:$0xff]  ;;  %215 = vst [vmem:[%s330_s1] sm:$0xff] %v214_v42  ;;  %217 = vst [vmem:[%s330_s1 + $0x8] sm:$0xff] %v216_v43 }
  0x15   :  { %219 = vst [vmem:[%s330_s1 + $0x10] sm:$0xff] %v218_v44  ;;  %v220_v45 = vld [vmem:[#allocation1 + $0x18] sm:$0xff]  ;;  %v222_v46 = vld [vmem:[#allocation1 + $0x20] sm:$0xff] }
  0x16   :  { %221 = vst [vmem:[%s330_s1 + $0x18] sm:$0xff] %v220_v45  ;;  %v224_v47 = vld [vmem:[#allocation1 + $0x28] sm:$0xff]  ;;  %223 = vst [vmem:[%s330_s1 + $0x20] sm:$0xff] %v222_v46 }
  0x17   :  { %225 = vst [vmem:[%s330_s1 + $0x28] sm:$0xff] %v224_v47  ;;  %v226_v48 = vld [vmem:[#allocation1 + $0x30] sm:$0xff]  ;;  %v228_v49 = vld [vmem:[#allocation1 + $0x38] sm:$0xff] }
  0x18   :  { %227 = vst [vmem:[%s330_s1 + $0x30] sm:$0xff] %v226_v48  ;;  %229 = vst [vmem:[%s330_s1 + $0x38] sm:$0xff] %v228_v49 }

// kernel: squeeze.1
= control target key start
LH: loop header
LB: loop body
LE: loop exit
PB: predicated region body
PF: predicated region fallthrough
CT: control target
= control target key end

     0   :  { %s463_s8 = smov 104   ;;  %vm7_vm0 = vcmask 64512   ;;  %s464_s9 = smov 112   ;;  %s650_s0 = inlined_call_operand.vmem [shape: f32[512], index: 0, kind: input, shape index: {}]   ;;  %s651_s1 = inlined_call_operand.vmem [shape: f32[2,2,8,2,8], index: 1, kind: output, shape index: {}]  }
   0x1   :  { %v4_v0 = vld [vmem:[%s650_s0] sm:$0xf]  ;;  %s462_s0 = smov 120   ;;  %s465_s10 = smov 96  }
   0x2   :  { %5 = vst [vmem:[#allocation1] sm:$0xf] %v4_v0  ;;  %s466_s11 = smov 88   ;;  %s467_s12 = smov 80  }
   0x3   :  { %s468_s13 = smov 72   ;;  %s469_s14 = smov 64  }
   0x4   :  { %s470_s15 = smov 56   ;;  %s471_s16 = smov 48  }
   0x5   :  { %s472_s17 = smov 40   ;;  %s473_s18 = smov 32  }
   0x6   :  { %s474_s19 = smov 24   ;;  %s475_s20 = smov 16  }
   0x7   :  { %s476_s21 = smov 8  }
   0x9   :  { %v15_v1 = vld [vmem:[#allocation1] sm:$0xf]  }
   0xa   :  { %v39_v2 = vld [vmem:[#allocation1] sm:$0xf]   ;;  %16 = vrot.lane.b32.xlu0 %v15_v1, %s462_s0 }
   0xb   :  { %40 = vrot.lane.b32.xlu1 %v39_v2, %s463_s8  ;;  %v27_v3 = vld [vmem:[#allocation1] sm:$0xf]  }
   0xc   :  { %v51_v4 = vld [vmem:[#allocation1] sm:$0xf]  }
   0xd   :  { %v6_v5 = vld [vmem:[#allocation1] sm:$0xf]  }
   0xe   :  { %28 = vrot.lane.b32.xlu0 %v27_v3, %s464_s9  ;;  %v63_v6 = vld [vmem:[#allocation1] sm:$0xf]   ;;  %8 = vst.msk [vmem:[#allocation0] sm:$0x1] %vm7_vm0, %v6_v5   ;;  %10 = vst.msk [vmem:[#allocation0 + $0x3f] sm:$0x2] %vm7_vm0, %v6_v5  }
   0xf   :  { %52 = vrot.lane.b32.xlu1 %v51_v4, %s465_s10  ;;  %v75_v7 = vld [vmem:[#allocation1] sm:$0xf]   ;;  %12 = vst.msk [vmem:[#allocation0 + $0x7e] sm:$0x4] %vm7_vm0, %v6_v5   ;;  %14 = vst.msk [vmem:[#allocation0 + $0xbd] sm:$0x8] %vm7_vm0, %v6_v5  }
  0x10   :  { %v87_v8 = vld [vmem:[#allocation1] sm:$0xf]  }
  0x11   :  { %v99_v9 = vld [vmem:[#allocation1] sm:$0xf]  }
  0x12   :  { %64 = vrot.lane.b32.xlu0 %v63_v6, %s466_s11  ;;  %v111_v10 = vld [vmem:[#allocation1] sm:$0xf]  }
  0x13   :  { %76 = vrot.lane.b32.xlu1 %v75_v7, %s467_s12  ;;  %v123_v11 = vld [vmem:[#allocation1] sm:$0xf]  }
  0x14   :  { %v135_v12 = vld [vmem:[#allocation1] sm:$0xf]  }
  0x15   :  { %v147_v13 = vld [vmem:[#allocation1] sm:$0xf]  }
  0x16   :  { %88 = vrot.lane.b32.xlu0 %v87_v8, %s468_s13  ;;  %v159_v14 = vld [vmem:[#allocation1] sm:$0xf]  }
  0x17   :  { %100 = vrot.lane.b32.xlu1 %v99_v9, %s469_s14  ;;  %v171_v15 = vld [vmem:[#allocation1] sm:$0xf]  }
  0x18   :  { %v183_v16 = vld [vmem:[#allocation1] sm:$0xf]  }
  0x1a   :  { %112 = vrot.lane.b32.xlu0 %v111_v10, %s470_s15 }
  0x1b   :  { %124 = vrot.lane.b32.xlu1 %v123_v11, %s471_s16 }
  0x1e   :  { %136 = vrot.lane.b32.xlu0 %v135_v12, %s472_s17 }
  0x1f   :  { %148 = vrot.lane.b32.xlu1 %v147_v13, %s473_s18 }
  0x22   :  { %160 = vrot.lane.b32.xlu0 %v159_v14, %s474_s19 }
  0x23   :  { %172 = vrot.lane.b32.xlu1 %v171_v15, %s475_s20 }
  0x26   :  { %184 = vrot.lane.b32.xlu0 %v183_v16, %s476_s21 }
  0x7c   :  { %v17_v17 = vpop.permute.xlu0 %16  }
  0x7d   :  { %v41_v18 = vpop.permute.xlu1 %40   ;;  %20 = vst.msk [vmem:[#allocation0 + $0x1] sm:$0x1] %vm7_vm0, %v17_v17   ;;  %22 = vst.msk [vmem:[#allocation0 + $0x40] sm:$0x2] %vm7_vm0, %v17_v17  }
  0x7e   :  { %24 = vst.msk [vmem:[#allocation0 + $0x7f] sm:$0x4] %vm7_vm0, %v17_v17   ;;  %26 = vst.msk [vmem:[#allocation0 + $0xbe] sm:$0x8] %vm7_vm0, %v17_v17  }
  0x7f   :  { %44 = vst.msk [vmem:[#allocation0 + $0x9] sm:$0x1] %vm7_vm0, %v41_v18   ;;  %46 = vst.msk [vmem:[#allocation0 + $0x48] sm:$0x2] %vm7_vm0, %v41_v18  }
  0x80   :  { %48 = vst.msk [vmem:[#allocation0 + $0x87] sm:$0x4] %vm7_vm0, %v41_v18   ;;  %50 = vst.msk [vmem:[#allocation0 + $0xc6] sm:$0x8] %vm7_vm0, %v41_v18   ;;  %v29_v19 = vpop.permute.xlu0 %28  }
  0x81   :  { %v53_v20 = vpop.permute.xlu1 %52   ;;  %32 = vst.msk [vmem:[#allocation0 + $0x8] sm:$0x1] %vm7_vm0, %v29_v19   ;;  %34 = vst.msk [vmem:[#allocation0 + $0x47] sm:$0x2] %vm7_vm0, %v29_v19  }
  0x82   :  { %36 = vst.msk [vmem:[#allocation0 + $0x86] sm:$0x4] %vm7_vm0, %v29_v19   ;;  %38 = vst.msk [vmem:[#allocation0 + $0xc5] sm:$0x8] %vm7_vm0, %v29_v19  }
  0x83   :  { %56 = vst.msk [vmem:[#allocation0 + $0x10] sm:$0x1] %vm7_vm0, %v53_v20   ;;  %58 = vst.msk [vmem:[#allocation0 + $0x4f] sm:$0x2] %vm7_vm0, %v53_v20  }
  0x84   :  { %60 = vst.msk [vmem:[#allocation0 + $0x8e] sm:$0x4] %vm7_vm0, %v53_v20   ;;  %62 = vst.msk [vmem:[#allocation0 + $0xcd] sm:$0x8] %vm7_vm0, %v53_v20   ;;  %v198_v21 = vld [vmem:[#allocation0] sm:$0x3]  ;;  %v65_v24 = vpop.permute.xlu0 %64  }
  0x85   :  { %v243_v22 = vld [vmem:[#allocation0 + $0x40] sm:$0x3]  ;;  %v77_v25 = vpop.permute.xlu1 %76   ;;  %200 = vst [vmem:[%s651_s1] sm:$0x3] %v198_v21  ;;  %68 = vst.msk [vmem:[#allocation0 + $0x11] sm:$0x1] %vm7_vm0, %v65_v24  }
  0x86   :  { %v291_v23 = vld [vmem:[#allocation0 + $0x80] sm:$0x3]  ;;  %423 = vst [vmem:[%s651_s1 + $0x10] sm:$0x3] %v243_v22  ;;  %70 = vst.msk [vmem:[#allocation0 + $0x50] sm:$0x2] %vm7_vm0, %v65_v24  }
  0x87   :  { %431 = vst [vmem:[%s651_s1 + $0x20] sm:$0x3] %v291_v23  ;;  %v339_v26 = vld [vmem:[#allocation0 + $0xc0] sm:$0x3]  ;;  %72 = vst.msk [vmem:[#allocation0 + $0x8f] sm:$0x4] %vm7_vm0, %v65_v24  }
  0x88   :  { %74 = vst.msk [vmem:[#allocation0 + $0xce] sm:$0x8] %vm7_vm0, %v65_v24   ;;  %80 = vst.msk [vmem:[#allocation0 + $0x18] sm:$0x1] %vm7_vm0, %v77_v25   ;;  %v202_v27 = vld [vmem:[#allocation0 + $0x8] sm:$0x3]  ;;  %v89_v30 = vpop.permute.xlu0 %88  }
  0x89   :  { %82 = vst.msk [vmem:[#allocation0 + $0x57] sm:$0x2] %vm7_vm0, %v77_v25   ;;  %84 = vst.msk [vmem:[#allocation0 + $0x96] sm:$0x4] %vm7_vm0, %v77_v25   ;;  %v249_v28 = vld [vmem:[#allocation0 + $0x48] sm:$0x3]  ;;  %v101_v31 = vpop.permute.xlu1 %100  }
  0x8a   :  { %86 = vst.msk [vmem:[#allocation0 + $0xd5] sm:$0x8] %vm7_vm0, %v77_v25   ;;  %439 = vst [vmem:[%s651_s1 + $0x30] sm:$0x3] %v339_v26  ;;  %v297_v29 = vld [vmem:[#allocation0 + $0x88] sm:$0x3] }
  0x8b   :  { %416 = vst [vmem:[%s651_s1 + $0x2] sm:$0x3] %v202_v27  ;;  %424 = vst [vmem:[%s651_s1 + $0x12] sm:$0x3] %v249_v28  ;;  %v345_v32 = vld [vmem:[#allocation0 + $0xc8] sm:$0x3] }
  0x8c   :  { %432 = vst [vmem:[%s651_s1 + $0x22] sm:$0x3] %v297_v29  ;;  %92 = vst.msk [vmem:[#allocation0 + $0x19] sm:$0x1] %vm7_vm0, %v89_v30   ;;  %v207_v35 = vld [vmem:[#allocation0 + $0x10] sm:$0x3]  ;;  %v113_v36 = vpop.permute.xlu0 %112  }
  0x8d   :  { %94 = vst.msk [vmem:[#allocation0 + $0x58] sm:$0x2] %vm7_vm0, %v89_v30   ;;  %96 = vst.msk [vmem:[#allocation0 + $0x97] sm:$0x4] %vm7_vm0, %v89_v30   ;;  %v255_v33 = vld [vmem:[#allocation0 + $0x50] sm:$0x3]  ;;  %v125_v37 = vpop.permute.xlu1 %124  }
  0x8e   :  { %98 = vst.msk [vmem:[#allocation0 + $0xd6] sm:$0x8] %vm7_vm0, %v89_v30   ;;  %104 = vst.msk [vmem:[#allocation0 + $0x20] sm:$0x1] %vm7_vm0, %v101_v31   ;;  %v303_v38 = vld [vmem:[#allocation0 + $0x90] sm:$0x3] }
  0x8f   :  { %106 = vst.msk [vmem:[#allocation0 + $0x5f] sm:$0x2] %vm7_vm0, %v101_v31   ;;  %108 = vst.msk [vmem:[#allocation0 + $0x9e] sm:$0x4] %vm7_vm0, %v101_v31   ;;  %v351_v34 = vld [vmem:[#allocation0 + $0xd0] sm:$0x3] }
  0x90   :  { %110 = vst.msk [vmem:[#allocation0 + $0xdd] sm:$0x8] %vm7_vm0, %v101_v31   ;;  %440 = vst [vmem:[%s651_s1 + $0x32] sm:$0x3] %v345_v32  ;;  %v137_v42 = vpop.permute.xlu0 %136  }
  0x91   :  { %425 = vst [vmem:[%s651_s1 + $0x14] sm:$0x3] %v255_v33  ;;  %441 = vst [vmem:[%s651_s1 + $0x34] sm:$0x3] %v351_v34  ;;  %v149_v43 = vpop.permute.xlu1 %148  }
  0x92   :  { %417 = vst [vmem:[%s651_s1 + $0x4] sm:$0x3] %v207_v35  ;;  %116 = vst.msk [vmem:[#allocation0 + $0x21] sm:$0x1] %vm7_vm0, %v113_v36  }
  0x93   :  { %118 = vst.msk [vmem:[#allocation0 + $0x60] sm:$0x2] %vm7_vm0, %v113_v36   ;;  %120 = vst.msk [vmem:[#allocation0 + $0x9f] sm:$0x4] %vm7_vm0, %v113_v36   ;;  %v213_v41 = vld [vmem:[#allocation0 + $0x18] sm:$0x3] }
  0x94   :  { %122 = vst.msk [vmem:[#allocation0 + $0xde] sm:$0x8] %vm7_vm0, %v113_v36   ;;  %128 = vst.msk [vmem:[#allocation0 + $0x28] sm:$0x1] %vm7_vm0, %v125_v37   ;;  %v261_v39 = vld [vmem:[#allocation0 + $0x58] sm:$0x3]  ;;  %v161_v48 = vpop.permute.xlu0 %160  }
  0x95   :  { %130 = vst.msk [vmem:[#allocation0 + $0x67] sm:$0x2] %vm7_vm0, %v125_v37   ;;  %132 = vst.msk [vmem:[#allocation0 + $0xa6] sm:$0x4] %vm7_vm0, %v125_v37   ;;  %v357_v40 = vld [vmem:[#allocation0 + $0xd8] sm:$0x3]  ;;  %v173_v49 = vpop.permute.xlu1 %172  }
  0x96   :  { %134 = vst.msk [vmem:[#allocation0 + $0xe5] sm:$0x8] %vm7_vm0, %v125_v37   ;;  %433 = vst [vmem:[%s651_s1 + $0x24] sm:$0x3] %v303_v38  ;;  %v309_v44 = vld [vmem:[#allocation0 + $0x98] sm:$0x3] }
  0x97   :  { %426 = vst [vmem:[%s651_s1 + $0x16] sm:$0x3] %v261_v39  ;;  %442 = vst [vmem:[%s651_s1 + $0x36] sm:$0x3] %v357_v40 }
  0x98   :  { %418 = vst [vmem:[%s651_s1 + $0x6] sm:$0x3] %v213_v41  ;;  %140 = vst.msk [vmem:[#allocation0 + $0x29] sm:$0x1] %vm7_vm0, %v137_v42   ;;  %v185_v54 = vpop.permute.xlu0 %184  }
  0x99   :  { %142 = vst.msk [vmem:[#allocation0 + $0x68] sm:$0x2] %vm7_vm0, %v137_v42   ;;  %144 = vst.msk [vmem:[#allocation0 + $0xa7] sm:$0x4] %vm7_vm0, %v137_v42   ;;  %v219_v45 = vld [vmem:[#allocation0 + $0x20] sm:$0x3] }
  0x9a   :  { %146 = vst.msk [vmem:[#allocation0 + $0xe6] sm:$0x8] %vm7_vm0, %v137_v42   ;;  %152 = vst.msk [vmem:[#allocation0 + $0x30] sm:$0x1] %vm7_vm0, %v149_v43   ;;  %v267_v46 = vld [vmem:[#allocation0 + $0x60] sm:$0x3] }
  0x9b   :  { %154 = vst.msk [vmem:[#allocation0 + $0x6f] sm:$0x2] %vm7_vm0, %v149_v43   ;;  %156 = vst.msk [vmem:[#allocation0 + $0xae] sm:$0x4] %vm7_vm0, %v149_v43   ;;  %v315_v47 = vld [vmem:[#allocation0 + $0xa0] sm:$0x3] }
  0x9c   :  { %158 = vst.msk [vmem:[#allocation0 + $0xed] sm:$0x8] %vm7_vm0, %v149_v43   ;;  %434 = vst [vmem:[%s651_s1 + $0x26] sm:$0x3] %v309_v44  ;;  %v363_v50 = vld [vmem:[#allocation0 + $0xe0] sm:$0x3] }
  0x9d   :  { %419 = vst [vmem:[%s651_s1 + $0x8] sm:$0x3] %v219_v45  ;;  %427 = vst [vmem:[%s651_s1 + $0x18] sm:$0x3] %v267_v46 }
  0x9e   :  { %435 = vst [vmem:[%s651_s1 + $0x28] sm:$0x3] %v315_v47  ;;  %164 = vst.msk [vmem:[#allocation0 + $0x31] sm:$0x1] %vm7_vm0, %v161_v48  }
  0x9f   :  { %166 = vst.msk [vmem:[#allocation0 + $0x70] sm:$0x2] %vm7_vm0, %v161_v48   ;;  %168 = vst.msk [vmem:[#allocation0 + $0xaf] sm:$0x4] %vm7_vm0, %v161_v48   ;;  %v225_v51 = vld [vmem:[#allocation0 + $0x28] sm:$0x3] }
  0xa0   :  { %170 = vst.msk [vmem:[#allocation0 + $0xee] sm:$0x8] %vm7_vm0, %v161_v48   ;;  %176 = vst.msk [vmem:[#allocation0 + $0x38] sm:$0x1] %vm7_vm0, %v173_v49   ;;  %v321_v52 = vld [vmem:[#allocation0 + $0xa8] sm:$0x3] }
  0xa1   :  { %178 = vst.msk [vmem:[#allocation0 + $0x77] sm:$0x2] %vm7_vm0, %v173_v49   ;;  %180 = vst.msk [vmem:[#allocation0 + $0xb6] sm:$0x4] %vm7_vm0, %v173_v49   ;;  %v273_v53 = vld [vmem:[#allocation0 + $0x68] sm:$0x3] }
  0xa2   :  { %182 = vst.msk [vmem:[#allocation0 + $0xf5] sm:$0x8] %vm7_vm0, %v173_v49   ;;  %443 = vst [vmem:[%s651_s1 + $0x38] sm:$0x3] %v363_v50  ;;  %v369_v55 = vld [vmem:[#allocation0 + $0xe8] sm:$0x3] }
  0xa3   :  { %420 = vst [vmem:[%s651_s1 + $0xa] sm:$0x3] %v225_v51  ;;  %436 = vst [vmem:[%s651_s1 + $0x2a] sm:$0x3] %v321_v52 }
  0xa4   :  { %428 = vst [vmem:[%s651_s1 + $0x1a] sm:$0x3] %v273_v53  ;;  %188 = vst.msk [vmem:[#allocation0 + $0x39] sm:$0x1] %vm7_vm0, %v185_v54  }
  0xa5   :  { %190 = vst.msk [vmem:[#allocation0 + $0x78] sm:$0x2] %vm7_vm0, %v185_v54   ;;  %192 = vst.msk [vmem:[#allocation0 + $0xb7] sm:$0x4] %vm7_vm0, %v185_v54   ;;  %v231_v57 = vld [vmem:[#allocation0 + $0x30] sm:$0x3] }
  0xa6   :  { %194 = vst.msk [vmem:[#allocation0 + $0xf6] sm:$0x8] %vm7_vm0, %v185_v54   ;;  %444 = vst [vmem:[%s651_s1 + $0x3a] sm:$0x3] %v369_v55  ;;  %v279_v56 = vld [vmem:[#allocation0 + $0x70] sm:$0x3] }
  0xa7   :  { %v327_v58 = vld [vmem:[#allocation0 + $0xb0] sm:$0x3]  ;;  %429 = vst [vmem:[%s651_s1 + $0x1c] sm:$0x3] %v279_v56  ;;  %421 = vst [vmem:[%s651_s1 + $0xc] sm:$0x3] %v231_v57 }
  0xa8   :  { %v375_v59 = vld [vmem:[#allocation0 + $0xf0] sm:$0x3]  ;;  %437 = vst [vmem:[%s651_s1 + $0x2c] sm:$0x3] %v327_v58 }
  0xa9   :  { %445 = vst [vmem:[%s651_s1 + $0x3c] sm:$0x3] %v375_v59 }
  0xab   :  { %v237_v60 = vld [vmem:[#allocation0 + $0x38] sm:$0x3] }
  0xac   :  { %v285_v62 = vld [vmem:[#allocation0 + $0x78] sm:$0x3]  ;;  %422 = vst [vmem:[%s651_s1 + $0xe] sm:$0x3] %v237_v60 }
  0xad   :  { %v381_v61 = vld [vmem:[#allocation0 + $0xf8] sm:$0x3]  ;;  %430 = vst [vmem:[%s651_s1 + $0x1e] sm:$0x3] %v285_v62 }
  0xae   :  { %446 = vst [vmem:[%s651_s1 + $0x3e] sm:$0x3] %v381_v61  ;;  %v333_v63 = vld [vmem:[#allocation0 + $0xb8] sm:$0x3] }
  0xaf   :  { %438 = vst [vmem:[%s651_s1 + $0x2e] sm:$0x3] %v333_v63 }

// kernel: ffc_bn_act_forward.8
= control target key start
LH: loop header
LB: loop body
LE: loop exit
PB: predicated region body
PF: predicated region fallthrough
CT: control target
= control target key end

     0   :  { %vm16_vm0 = vcmask 64512   ;;  %v144_v0 = vmov 0.0   ;;  %vm145_vm1 = vmmov 0   ;;  %v146_v6 = vmov 0   ;;  %s148_s16 = smov 1   ;;  %s181_s0 = inlined_call_operand.vmem [shape: f32[8,128], index: 0, kind: input, shape index: {}]   ;;  %s182_s1 = inlined_call_operand.vmem [shape: f32[8,8], index: 1, kind: input, shape index: {}]   ;;  %s183_s2 = inlined_call_operand.vmem [shape: f32[8,2], index: 2, kind: input, shape index: {}]   ;;  %s184_s3 = inlined_call_operand.vmem [shape: f32[8,128], index: 3, kind: output, shape index: {}]  }
   0x1   :  { %130 = vmatprep.subr.mxu0 %v144_v0  ;;  %v15_v1 = vld [vmem:[%s181_s0] sm:$0xff]  ;;  %132 = vmatprep.mubr.msk.f32.mxu0 %vm145_vm1, %v144_v0  ;;  %v147_v14 = vmov 1  }
   0x2   :  { %v14_v2 = vld [vmem:[%s182_s1] sm:$0xff]  ;;  %131 = vmatpush3.msra.mxu0 %v15_v1  ;;  %140 = vset.pattern.permute.xlu1 %v146_v6 }
   0x3   :  { %133 = vmatmul.mubr.msk.f32.vlgmr.msra.gmra.mrb[0].mxu0 %vm16_vm0, %v14_v2  ;;  %141 = vset.pattern.permute.xlu0 %v147_v14  ;;  %v99_v15 = vld [vmem:[%s183_s2] sm:$0xff] }
  0xd6   :  { %v86_v3 = vpop.f32.mrb[0].mxu0 }
  0xd7   :  { %90 = vadd.xlane.f32.xlu0 %v86_v3  ;;  %v134_v4 = vpop.f32.mrb[1].mxu0  ;;  %v92_v5 = vmul.f32 %v86_v3, %v86_v3 }
  0xdb   :  { %93 = vadd.xlane.f32.xlu0 %v92_v5 }
 0x164   :  { %v91_v7 = vpop.xlane.xlu0 %90 }
 0x165   :  { %v95_v8 = vmul.f32 0.0125, %v91_v7 }
 0x167   :  { %v97_v10 = vmul.f32 %v95_v8, %v95_v8 }
 0x168   :  { %v94_v9 = vpop.xlane.xlu0 %93 }
 0x169   :  { %v96_v11 = vmul.f32 0.0125, %v94_v9 }
 0x16b   :  { %v98_v12 = vsub.f32 %v96_v11, %v97_v10 }
 0x16d   :  { %v100_v13 = vadd.f32 1e-05, %v98_v12 }
 0x16f   :  { %142 = vrsqrt.f32 %v100_v13 }
 0x179   :  { %v143_v16 = vpop.eup %142 }
 0x17a   :  { %v102_v17 = vmul.f32 %v143_v16, %v99_v15 }
 0x17c   :  { %v103_v18 = vmul.f32 %v102_v17, %v95_v8 }
 0x17e   :  { %105 = vrot.lane.b32.xlu1 %v103_v18, %s148_s16 }
 0x182   :  { %111 = vperm.xlu1 %140, %v102_v17  }
 0x1f0   :  { %v106_v19 = vpop.permute.xlu1 %105 }
 0x1f1   :  { %v108_v20 = vsub.f32 %v99_v15, %v106_v19 }
 0x1f3   :  { %117 = vperm.xlu0 %141, %v108_v20  }
 0x201   :  { %v112_v21 = vpop.permute.xlu1 %111 }
 0x202   :  { %v114_v22 = vmul.f32 %v112_v21, %v86_v3 }
 0x272   :  { %v118_v23 = vpop.permute.xlu0 %117 }
 0x273   :  { %v120_v24 = vadd.f32 %v118_v23, %v114_v22 }
 0x275   :  { %v121_v25 = vmax.f32 %v120_v24, 0.0 }
 0x277   :  { %122 = vst [vmem:[%s184_s3] sm:$0xff] %v121_v25 }

// kernel: reverse.1
= control target key start
LH: loop header
LB: loop body
LE: loop exit
PB: predicated region body
PF: predicated region fallthrough
CT: control target
= control target key end

     0   :  { %v79_v8 = vld [vmem:[#allocation1 + $0x38] sm:$0xf]  ;;  %v89_v9 = vld [vmem:[#allocation1 + $0x30] sm:$0xf]  ;;  %v99_v10 = vld [vmem:[#allocation1 + $0x28] sm:$0xf]  ;;  %v156_v12 = vlaneseq  ;;  %s487_s0 = inlined_call_operand.vmem [shape: f32[4,2,8,3], index: 0, kind: input, shape index: {}]   ;;  %s488_s1 = inlined_call_operand.vmem [shape: f32[4,2,8,3], index: 1, kind: output, shape index: {}]  }
   0x1   :  { %v18_v0 = vld [vmem:[%s487_s0] sm:$0xf]  ;;  %v20_v1 = vld [vmem:[%s487_s0 + $0x4] sm:$0xf]  ;;  %v22_v2 = vld [vmem:[%s487_s0 + $0x8] sm:$0xf] }
   0x2   :  { %19 = vst [vmem:[#allocation1 + $0x4] sm:$0xf] %v18_v0  ;;  %21 = vst [vmem:[#allocation1 + $0xc] sm:$0xf] %v20_v1  ;;  %v24_v3 = vld [vmem:[%s487_s0 + $0xc] sm:$0xf] }
   0x3   :  { %23 = vst [vmem:[#allocation1 + $0x14] sm:$0xf] %v22_v2  ;;  %v26_v4 = vld [vmem:[%s487_s0 + $0x10] sm:$0xf]  ;;  %v28_v5 = vld [vmem:[%s487_s0 + $0x14] sm:$0xf] }
   0x4   :  { %25 = vst [vmem:[#allocation1 + $0x1c] sm:$0xf] %v24_v3  ;;  %27 = vst [vmem:[#allocation1 + $0x24] sm:$0xf] %v26_v4  ;;  %v30_v6 = vld [vmem:[%s487_s0 + $0x18] sm:$0xf] }
   0x5   :  { %29 = vst [vmem:[#allocation1 + $0x2c] sm:$0xf] %v28_v5  ;;  %v32_v7 = vld [vmem:[%s487_s0 + $0x1c] sm:$0xf]  ;;  %31 = vst [vmem:[#allocation1 + $0x34] sm:$0xf] %v30_v6 }
   0x6   :  { %33 = vst [vmem:[#allocation1 + $0x3c] sm:$0xf] %v32_v7  ;;  %81 = vst [vmem:[#allocation0 + $0x70] sm:$0xf] %v79_v8  ;;  %v109_v11 = vld [vmem:[#allocation1 + $0x20] sm:$0xf] }
   0x7   :  { %91 = vst [vmem:[#allocation0 + $0x60] sm:$0xf] %v89_v9  ;;  %101 = vst [vmem:[#allocation0 + $0x50] sm:$0xf] %v99_v10  ;;  %v119_v13 = vld [vmem:[#allocation1 + $0x18] sm:$0xf] }
   0x8   :  { %111 = vst [vmem:[#allocation0 + $0x40] sm:$0xf] %v109_v11  ;;  %v129_v14 = vld [vmem:[#allocation1 + $0x10] sm:$0xf]  ;;  %v139_v15 = vld [vmem:[#allocation1 + $0x8] sm:$0xf] }
   0x9   :  { %121 = vst [vmem:[#allocation0 + $0x30] sm:$0xf] %v119_v13  ;;  %131 = vst [vmem:[#allocation0 + $0x20] sm:$0xf] %v129_v14  ;;  %v146_v16 = vld [vmem:[#allocation1] sm:$0xf] }
   0xa   :  { %141 = vst [vmem:[#allocation0 + $0x10] sm:$0xf] %v139_v15  ;;  %147 = vst [vmem:[#allocation0] sm:$0xf] %v146_v16  ;;  %v456_v17 = vshrl.u32 %v156_v12, 7 }
   0xb   :  { %v124_v18 = vld [vmem:[#allocation1 + $0x14] sm:$0xf]  ;;  %v134_v19 = vld [vmem:[#allocation1 + $0xc] sm:$0xf]  ;;  %v143_v20 = vld [vmem:[#allocation1 + $0x4] sm:$0xf] }
   0xc   :  { %v94_v21 = vld [vmem:[#allocation1 + $0x2c] sm:$0xf]  ;;  %v104_v22 = vld [vmem:[#allocation1 + $0x24] sm:$0xf]  ;;  %v114_v23 = vld [vmem:[#allocation1 + $0x1c] sm:$0xf] }
   0xd   :  { %126 = vst [vmem:[#allocation0 + $0x28] sm:$0xf] %v124_v18  ;;  %136 = vst [vmem:[#allocation0 + $0x18] sm:$0xf] %v134_v19  ;;  %v74_v24 = vld [vmem:[#allocation1 + $0x3c] sm:$0xf] }
   0xe   :  { %145 = vst [vmem:[#allocation0 + $0x8] sm:$0xf] %v143_v20  ;;  %v84_v25 = vld [vmem:[#allocation1 + $0x34] sm:$0xf]  ;;  %96 = vst [vmem:[#allocation0 + $0x58] sm:$0xf] %v94_v21 }
   0xf   :  { %106 = vst [vmem:[#allocation0 + $0x48] sm:$0xf] %v104_v22  ;;  %116 = vst [vmem:[#allocation0 + $0x38] sm:$0xf] %v114_v23  ;;  %v247_v26 = vld [vmem:[#allocation0 + $0x77] ss:$-1 sm:$0xff] }
  0x10   :  { %76 = vst [vmem:[#allocation0 + $0x78] sm:$0xf] %v74_v24  ;;  %86 = vst [vmem:[#allocation0 + $0x68] sm:$0xf] %v84_v25  ;;  %v205_v27 = vld [vmem:[#allocation0 + $0x47] ss:$-1 sm:$0xff] }
  0x11   :  { %v219_v28 = vld [vmem:[#allocation0 + $0x57] ss:$-1 sm:$0xff]  ;;  %v233_v29 = vld [vmem:[#allocation0 + $0x67] ss:$-1 sm:$0xff]  ;;  %v206_v37 = vrot.slane %v205_v27, 5  ;;  %v248_v41 = vrot.slane %v247_v26, 5 }
  0x12   :  { %v163_v30 = vld [vmem:[#allocation0 + $0x17] ss:$-1 sm:$0xff]  ;;  %v177_v31 = vld [vmem:[#allocation0 + $0x27] ss:$-1 sm:$0xff]  ;;  %v220_v39 = vrot.slane %v219_v28, 5  ;;  %v234_v40 = vrot.slane %v233_v29, 5 }
  0x13   :  { %v191_v32 = vld [vmem:[#allocation0 + $0x37] ss:$-1 sm:$0xff]  ;;  %v149_v33 = vld [vmem:[#allocation0 + $0x7] ss:$-1 sm:$0xff]  ;;  %v164_v34 = vrot.slane %v163_v30, 5  ;;  %v178_v35 = vrot.slane %v177_v31, 5 }
  0x14   :  { %v192_v36 = vrot.slane %v191_v32, 5  ;;  %v150_v38 = vrot.slane %v149_v33, 5  ;;  %vm158_vm0 = vcmp.lt.s32.totalorder %v456_v17, 3  ;;  %207 = vst [vmem:[#allocation2 + $0x20] sm:$0xff] %v206_v37  ;;  %v168_v43 = vld [vmem:[#allocation0 + $0x1f] ss:$-1 sm:$0xff] }
  0x15   :  { %165 = vst [vmem:[#allocation2 + $0x8] sm:$0xff] %v164_v34  ;;  %179 = vst [vmem:[#allocation2 + $0x10] sm:$0xff] %v178_v35  ;;  %v154_v42 = vld [vmem:[#allocation0 + $0xf] ss:$-1 sm:$0xff]  ;;  %v169_v46 = vrot.slane %v168_v43, 5 }
  0x16   :  { %193 = vst [vmem:[#allocation2 + $0x18] sm:$0xff] %v192_v36  ;;  %151 = vst [vmem:[#allocation2] sm:$0xff] %v150_v38  ;;  %v182_v44 = vld [vmem:[#allocation0 + $0x2f] ss:$-1 sm:$0xff]  ;;  %v155_v45 = vrot.slane %v154_v42, 5 }
  0x17   :  { %221 = vst [vmem:[#allocation2 + $0x28] sm:$0xff] %v220_v39  ;;  %235 = vst [vmem:[#allocation2 + $0x30] sm:$0xff] %v234_v40  ;;  %v183_v47 = vrot.slane %v182_v44, 5  ;;  %v196_v48 = vld [vmem:[#allocation0 + $0x3f] ss:$-1 sm:$0xff] }
  0x18   :  { %249 = vst [vmem:[#allocation2 + $0x38] sm:$0xff] %v248_v41  ;;  %v197_v49 = vrot.slane %v196_v48, 5  ;;  %v210_v50 = vld [vmem:[#allocation0 + $0x4f] ss:$-1 sm:$0xff]  ;;  %v224_v51 = vld [vmem:[#allocation0 + $0x5f] ss:$-1 sm:$0xff] }
  0x19   :  { %159 = vst.msk [vmem:[#allocation2] sm:$0xff] %vm158_vm0, %v155_v45  ;;  %173 = vst.msk [vmem:[#allocation2 + $0x8] sm:$0xff] %vm158_vm0, %v169_v46  ;;  %v211_v52 = vrot.slane %v210_v50, 5  ;;  %v225_v53 = vrot.slane %v224_v51, 5  ;;  %v238_v54 = vld [vmem:[#allocation0 + $0x6f] ss:$-1 sm:$0xff] }
  0x1a   :  { %187 = vst.msk [vmem:[#allocation2 + $0x10] sm:$0xff] %vm158_vm0, %v183_v47  ;;  %v252_v55 = vld [vmem:[#allocation0 + $0x7f] ss:$-1 sm:$0xff]  ;;  %201 = vst.msk [vmem:[#allocation2 + $0x18] sm:$0xff] %vm158_vm0, %v197_v49  ;;  %v239_v56 = vrot.slane %v238_v54, 5 }
  0x1b   :  { %v253_v57 = vrot.slane %v252_v55, 5  ;;  %215 = vst.msk [vmem:[#allocation2 + $0x20] sm:$0xff] %vm158_vm0, %v211_v52  ;;  %229 = vst.msk [vmem:[#allocation2 + $0x28] sm:$0xff] %vm158_vm0, %v225_v53 }
  0x1c   :  { %243 = vst.msk [vmem:[#allocation2 + $0x30] sm:$0xff] %vm158_vm0, %v239_v56 }
  0x1d   :  { %257 = vst.msk [vmem:[#allocation2 + $0x38] sm:$0xff] %vm158_vm0, %v253_v57 }
  0x20   :  { %v261_v58 = vld [vmem:[#allocation2] sm:$0xf]  ;;  %v265_v59 = vld [vmem:[#allocation2 + $0x8] sm:$0xf] }
  0x21   :  { %v270_v60 = vld [vmem:[#allocation2 + $0x10] sm:$0xf]  ;;  %263 = vst [vmem:[#allocation3] sm:$0xf] %v261_v58  ;;  %268 = vst [vmem:[#allocation3 + $0x4] sm:$0xf] %v265_v59 }
  0x22   :  { %274 = vst [vmem:[#allocation3 + $0x8] sm:$0xf] %v270_v60  ;;  %v276_v61 = vld [vmem:[#allocation2 + $0x18] sm:$0xf]  ;;  %v282_v62 = vld [vmem:[#allocation2 + $0x20] sm:$0xf] }
  0x23   :  { %280 = vst [vmem:[#allocation3 + $0xc] sm:$0xf] %v276_v61  ;;  %v288_v63 = vld [vmem:[#allocation2 + $0x28] sm:$0xf]  ;;  %286 = vst [vmem:[#allocation3 + $0x10] sm:$0xf] %v282_v62 }
  0x24   :  { %292 = vst [vmem:[#allocation3 + $0x14] sm:$0xf] %v288_v63  ;;  %v294_v0 = vld [vmem:[#allocation2 + $0x30] sm:$0xf]  ;;  %v300_v1 = vld [vmem:[#allocation2 + $0x38] sm:$0xf] }
  0x25   :  { %298 = vst [vmem:[#allocation3 + $0x18] sm:$0xf] %v294_v0  ;;  %304 = vst [vmem:[#allocation3 + $0x1c] sm:$0xf] %v300_v1 }
  0x28   :  { %v320_v2 = vld [vmem:[#allocation3] sm:$0xff]  }
  0x29   :  { %321 = vst [vmem:[%s488_s1] sm:$0xff] %v320_v2  }
  0x2a   :  { %v324_v3 = vld [vmem:[#allocation3 + $0x8] sm:$0xff]  }
  0x2b   :  { %325 = vst [vmem:[%s488_s1 + $0x8] sm:$0xff] %v324_v3   ;;  %v328_v4 = vld [vmem:[#allocation3 + $0x10] sm:$0xff]  }
  0x2c   :  { %329 = vst [vmem:[%s488_s1 + $0x10] sm:$0xff] %v328_v4   ;;  %v332_v5 = vld [vmem:[#allocation3 + $0x18] sm:$0xff]  }
  0x2d   :  { %333 = vst [vmem:[%s488_s1 + $0x18] sm:$0xff] %v332_v5  }

// kernel: tile.9
= control target key start
LH: loop header
LB: loop body
LE: loop exit
PB: predicated region body
PF: predicated region fallthrough
CT: control target
= control target key end

     0   :  { %vm642_vm0 = vcmask 1047556   ;;  %s1240_s10 = smov 8   ;;  %vm644_vm1 = vcmask 64512   ;;  %vm789_vm2 = vcmask 130112   ;;  %s1811_s0 = inlined_call_operand.vmem [shape: f32[4,2,2,8,2,8], index: 0, kind: input, shape index: {}]   ;;  %s1812_s1 = inlined_call_operand.vmem [shape: f32[4,2,16,16], index: 1, kind: output, shape index: {}]  }
   0x1   :  { %v1202_v0 = vld [vmem:[%s1811_s0 + $0xe] sm:$0x3]  ;;  %v1203_v1 = vld [vmem:[%s1811_s0 + $0xc] sm:$0x3]  ;;  %v1204_v2 = vld [vmem:[%s1811_s0 + $0xa] sm:$0x3] }
   0x2   :  { %608 = vst [vmem:[#allocation0 + $0x38] sm:$0x3] %v1202_v0  ;;  %613 = vst [vmem:[#allocation0 + $0x30] sm:$0x3] %v1203_v1  ;;  %v1205_v3 = vld [vmem:[%s1811_s0 + $0x8] sm:$0x3] }
   0x3   :  { %618 = vst [vmem:[#allocation0 + $0x28] sm:$0x3] %v1204_v2  ;;  %v1206_v4 = vld [vmem:[%s1811_s0 + $0x6] sm:$0x3]  ;;  %v1207_v5 = vld [vmem:[%s1811_s0 + $0x4] sm:$0x3] }
   0x4   :  { %623 = vst [vmem:[#allocation0 + $0x20] sm:$0x3] %v1205_v3  ;;  %628 = vst [vmem:[#allocation0 + $0x18] sm:$0x3] %v1206_v4  ;;  %v1208_v6 = vld [vmem:[%s1811_s0 + $0x2] sm:$0x3] }
   0x5   :  { %633 = vst [vmem:[#allocation0 + $0x10] sm:$0x3] %v1207_v5  ;;  %v638_v7 = vld [vmem:[%s1811_s0] sm:$0x3]  ;;  %637 = vst [vmem:[#allocation0 + $0x8] sm:$0x3] %v1208_v6 }
   0x6   :  { %639 = vst [vmem:[#allocation0] sm:$0x3] %v638_v7  ;;  %v1138_v8 = vld [vmem:[%s1811_s0 + $0x8e] sm:$0x3]  ;;  %v1139_v9 = vld [vmem:[%s1811_s0 + $0x8c] sm:$0x3] }
   0x7   :  { %v1140_v10 = vld [vmem:[%s1811_s0 + $0x8a] sm:$0x3]  ;;  %288 = vst [vmem:[#allocation0 + $0x238] sm:$0x3] %v1138_v8  ;;  %293 = vst [vmem:[#allocation0 + $0x230] sm:$0x3] %v1139_v9 }
   0x8   :  { %298 = vst [vmem:[#allocation0 + $0x228] sm:$0x3] %v1140_v10  ;;  %v1141_v11 = vld [vmem:[%s1811_s0 + $0x88] sm:$0x3]  ;;  %v1142_v12 = vld [vmem:[%s1811_s0 + $0x86] sm:$0x3] }
   0x9   :  { %v1143_v13 = vld [vmem:[%s1811_s0 + $0x84] sm:$0x3]  ;;  %303 = vst [vmem:[#allocation0 + $0x220] sm:$0x3] %v1141_v11  ;;  %308 = vst [vmem:[#allocation0 + $0x218] sm:$0x3] %v1142_v12 }
   0xa   :  { %313 = vst [vmem:[#allocation0 + $0x210] sm:$0x3] %v1143_v13  ;;  %v1144_v14 = vld [vmem:[%s1811_s0 + $0x82] sm:$0x3]  ;;  %v1145_v15 = vld [vmem:[%s1811_s0 + $0x80] sm:$0x3] }
   0xb   :  { %v1170_v16 = vld [vmem:[%s1811_s0 + $0x4e] sm:$0x3]  ;;  %318 = vst [vmem:[#allocation0 + $0x208] sm:$0x3] %v1144_v14  ;;  %323 = vst [vmem:[#allocation0 + $0x200] sm:$0x3] %v1145_v15 }
   0xc   :  { %448 = vst [vmem:[#allocation0 + $0x138] sm:$0x3] %v1170_v16  ;;  %v1171_v17 = vld [vmem:[%s1811_s0 + $0x4c] sm:$0x3]  ;;  %v1172_v18 = vld [vmem:[%s1811_s0 + $0x4a] sm:$0x3] }
   0xd   :  { %v1173_v19 = vld [vmem:[%s1811_s0 + $0x48] sm:$0x3]  ;;  %453 = vst [vmem:[#allocation0 + $0x130] sm:$0x3] %v1171_v17  ;;  %458 = vst [vmem:[#allocation0 + $0x128] sm:$0x3] %v1172_v18 }
   0xe   :  { %463 = vst [vmem:[#allocation0 + $0x120] sm:$0x3] %v1173_v19  ;;  %v1174_v20 = vld [vmem:[%s1811_s0 + $0x46] sm:$0x3]  ;;  %v1175_v21 = vld [vmem:[%s1811_s0 + $0x44] sm:$0x3] }
   0xf   :  { %v1176_v22 = vld [vmem:[%s1811_s0 + $0x42] sm:$0x3]  ;;  %468 = vst [vmem:[#allocation0 + $0x118] sm:$0x3] %v1174_v20  ;;  %473 = vst [vmem:[#allocation0 + $0x110] sm:$0x3] %v1175_v21 }
  0x10   :  { %478 = vst [vmem:[#allocation0 + $0x108] sm:$0x3] %v1176_v22  ;;  %v1177_v23 = vld [vmem:[%s1811_s0 + $0x40] sm:$0x3]  ;;  %v1106_v24 = vld [vmem:[%s1811_s0 + $0xce] sm:$0x3] }
  0x11   :  { %v1107_v25 = vld [vmem:[%s1811_s0 + $0xcc] sm:$0x3]  ;;  %v784_v26 = vld [vmem:[#allocation0 + $0x1] ss:$8 sm:$0xf0]  }
  0x12   :  { %483 = vst [vmem:[#allocation0 + $0x100] sm:$0x3] %v1177_v23  ;;  %128 = vst [vmem:[#allocation0 + $0x338] sm:$0x3] %v1106_v24  ;;  %v1108_v27 = vld [vmem:[%s1811_s0 + $0xca] sm:$0x3] }
  0x13   :  { %133 = vst [vmem:[#allocation0 + $0x330] sm:$0x3] %v1107_v25  ;;  %v782_v28 = vld [vmem:[#allocation0 + $0x1] ss:$8 sm:$0xf]  }
  0x14   :  { %138 = vst [vmem:[#allocation0 + $0x328] sm:$0x3] %v1108_v27  ;;  %v1109_v29 = vld [vmem:[%s1811_s0 + $0xc8] sm:$0x3]  ;;  %v786_v30 = vsel %vm642_vm0, %v784_v26, %v782_v28  ;;  %v1110_v31 = vld [vmem:[%s1811_s0 + $0xc6] sm:$0x3] }
  0x15   :  { %143 = vst [vmem:[#allocation0 + $0x320] sm:$0x3] %v1109_v29  ;;  %v1111_v32 = vld [vmem:[%s1811_s0 + $0xc4] sm:$0x3]  ;;  %v1112_v33 = vld [vmem:[%s1811_s0 + $0xc2] sm:$0x3]  ;;  %787 = vrot.lane.b32.xlu0 %v786_v30, %s1240_s10 }
  0x16   :  { %v805_v34 = vld [vmem:[#allocation0 + $0x201] ss:$8 sm:$0xf0]   ;;  %148 = vst [vmem:[#allocation0 + $0x318] sm:$0x3] %v1110_v31 }
  0x17   :  { %153 = vst [vmem:[#allocation0 + $0x310] sm:$0x3] %v1111_v32  ;;  %158 = vst [vmem:[#allocation0 + $0x308] sm:$0x3] %v1112_v33  ;;  %v1113_v35 = vld [vmem:[%s1811_s0 + $0xc0] sm:$0x3] }
  0x18   :  { %v803_v36 = vld [vmem:[#allocation0 + $0x201] ss:$8 sm:$0xf]   ;;  %163 = vst [vmem:[#allocation0 + $0x300] sm:$0x3] %v1113_v35 }
  0x19   :  { %v1194_v37 = vld [vmem:[%s1811_s0 + $0x1e] sm:$0x3]  ;;  %v807_v38 = vsel %vm642_vm0, %v805_v34, %v803_v36  ;;  %v794_v39 = vld [vmem:[#allocation0 + $0x101] ss:$8 sm:$0xf0]  }
  0x1a   :  { %568 = vst [vmem:[#allocation0 + $0x78] sm:$0x3] %v1194_v37  ;;  %v1195_v40 = vld [vmem:[%s1811_s0 + $0x1c] sm:$0x3]  ;;  %808 = vrot.lane.b32.xlu1 %v807_v38, %s1240_s10  ;;  %v1196_v41 = vld [vmem:[%s1811_s0 + $0x1a] sm:$0x3] }
  0x1b   :  { %573 = vst [vmem:[#allocation0 + $0x70] sm:$0x3] %v1195_v40  ;;  %v1197_v42 = vld [vmem:[%s1811_s0 + $0x18] sm:$0x3]  ;;  %v1198_v43 = vld [vmem:[%s1811_s0 + $0x16] sm:$0x3] }
  0x1c   :  { %v792_v44 = vld [vmem:[#allocation0 + $0x101] ss:$8 sm:$0xf]   ;;  %578 = vst [vmem:[#allocation0 + $0x68] sm:$0x3] %v1196_v41 }
  0x1d   :  { %583 = vst [vmem:[#allocation0 + $0x60] sm:$0x3] %v1197_v42  ;;  %588 = vst [vmem:[#allocation0 + $0x58] sm:$0x3] %v1198_v43  ;;  %v1199_v45 = vld [vmem:[%s1811_s0 + $0x14] sm:$0x3]  ;;  %v796_v46 = vsel %vm642_vm0, %v794_v39, %v792_v44 }
  0x1e   :  { %593 = vst [vmem:[#allocation0 + $0x50] sm:$0x3] %v1199_v45  ;;  %v1200_v47 = vld [vmem:[%s1811_s0 + $0x12] sm:$0x3]  ;;  %v1201_v48 = vld [vmem:[%s1811_s0 + $0x10] sm:$0x3]  ;;  %797 = vrot.lane.b32.xlu0 %v796_v46, %s1240_s10 }
  0x1f   :  { %v1162_v49 = vld [vmem:[%s1811_s0 + $0x5e] sm:$0x3]  ;;  %v816_v50 = vld [vmem:[#allocation0 + $0x301] ss:$8 sm:$0xf0]  }
  0x20   :  { %598 = vst [vmem:[#allocation0 + $0x48] sm:$0x3] %v1200_v47  ;;  %603 = vst [vmem:[#allocation0 + $0x40] sm:$0x3] %v1201_v48  ;;  %v1163_v51 = vld [vmem:[%s1811_s0 + $0x5c] sm:$0x3] }
  0x21   :  { %408 = vst [vmem:[#allocation0 + $0x178] sm:$0x3] %v1162_v49  ;;  %413 = vst [vmem:[#allocation0 + $0x170] sm:$0x3] %v1163_v51  ;;  %v1164_v52 = vld [vmem:[%s1811_s0 + $0x5a] sm:$0x3] }
  0x22   :  { %v1165_v53 = vld [vmem:[%s1811_s0 + $0x58] sm:$0x3]  ;;  %v1166_v54 = vld [vmem:[%s1811_s0 + $0x56] sm:$0x3]  ;;  %418 = vst [vmem:[#allocation0 + $0x168] sm:$0x3] %v1164_v52 }
  0x23   :  { %v814_v55 = vld [vmem:[#allocation0 + $0x301] ss:$8 sm:$0xf]   ;;  %423 = vst [vmem:[#allocation0 + $0x160] sm:$0x3] %v1165_v53 }
  0x24   :  { %428 = vst [vmem:[#allocation0 + $0x158] sm:$0x3] %v1166_v54  ;;  %v1167_v56 = vld [vmem:[%s1811_s0 + $0x54] sm:$0x3]  ;;  %v818_v57 = vsel %vm642_vm0, %v816_v50, %v814_v55  ;;  %v1168_v58 = vld [vmem:[%s1811_s0 + $0x52] sm:$0x3] }
  0x25   :  { %433 = vst [vmem:[#allocation0 + $0x150] sm:$0x3] %v1167_v56  ;;  %v1169_v59 = vld [vmem:[%s1811_s0 + $0x50] sm:$0x3]  ;;  %v1130_v60 = vld [vmem:[%s1811_s0 + $0x9e] sm:$0x3]  ;;  %819 = vrot.lane.b32.xlu1 %v818_v57, %s1240_s10 }
  0x26   :  { %438 = vst [vmem:[#allocation0 + $0x148] sm:$0x3] %v1168_v58  ;;  %443 = vst [vmem:[#allocation0 + $0x140] sm:$0x3] %v1169_v59  ;;  %v1131_v61 = vld [vmem:[%s1811_s0 + $0x9c] sm:$0x3] }
  0x27   :  { %248 = vst [vmem:[#allocation0 + $0x278] sm:$0x3] %v1130_v60  ;;  %v1132_v62 = vld [vmem:[%s1811_s0 + $0x9a] sm:$0x3]  ;;  %v1133_v63 = vld [vmem:[%s1811_s0 + $0x98] sm:$0x3] }
  0x28   :  { %v827_v0 = vld [vmem:[#allocation0 + $0x41] ss:$8 sm:$0xf0]   ;;  %253 = vst [vmem:[#allocation0 + $0x270] sm:$0x3] %v1131_v61 }
  0x29   :  { %258 = vst [vmem:[#allocation0 + $0x268] sm:$0x3] %v1132_v62  ;;  %263 = vst [vmem:[#allocation0 + $0x260] sm:$0x3] %v1133_v63  ;;  %v1134_v1 = vld [vmem:[%s1811_s0 + $0x96] sm:$0x3] }
  0x2a   :  { %268 = vst [vmem:[#allocation0 + $0x258] sm:$0x3] %v1134_v1  ;;  %v1135_v2 = vld [vmem:[%s1811_s0 + $0x94] sm:$0x3]  ;;  %v1136_v3 = vld [vmem:[%s1811_s0 + $0x92] sm:$0x3] }
  0x2b   :  { %v1137_v4 = vld [vmem:[%s1811_s0 + $0x90] sm:$0x3]  ;;  %273 = vst [vmem:[#allocation0 + $0x250] sm:$0x3] %v1135_v2  ;;  %278 = vst [vmem:[#allocation0 + $0x248] sm:$0x3] %v1136_v3 }
  0x2c   :  { %v825_v5 = vld [vmem:[#allocation0 + $0x41] ss:$8 sm:$0xf]   ;;  %283 = vst [vmem:[#allocation0 + $0x240] sm:$0x3] %v1137_v4 }
  0x2d   :  { %v1098_v6 = vld [vmem:[%s1811_s0 + $0xde] sm:$0x3]  ;;  %v829_v7 = vsel %vm642_vm0, %v827_v0, %v825_v5  ;;  %v1099_v8 = vld [vmem:[%s1811_s0 + $0xdc] sm:$0x3]  ;;  %v1100_v9 = vld [vmem:[%s1811_s0 + $0xda] sm:$0x3] }
  0x2e   :  { %88 = vst [vmem:[#allocation0 + $0x378] sm:$0x3] %v1098_v6  ;;  %v1101_v10 = vld [vmem:[%s1811_s0 + $0xd8] sm:$0x3]  ;;  %830 = vrot.lane.b32.xlu0 %v829_v7, %s1240_s10  ;;  %93 = vst [vmem:[#allocation0 + $0x370] sm:$0x3] %v1099_v8 }
  0x2f   :  { %v838_v11 = vld [vmem:[#allocation0 + $0x141] ss:$8 sm:$0xf0]   ;;  %98 = vst [vmem:[#allocation0 + $0x368] sm:$0x3] %v1100_v9 }
  0x30   :  { %103 = vst [vmem:[#allocation0 + $0x360] sm:$0x3] %v1101_v10  ;;  %v1102_v12 = vld [vmem:[%s1811_s0 + $0xd6] sm:$0x3]  ;;  %v1103_v13 = vld [vmem:[%s1811_s0 + $0xd4] sm:$0x3] }
  0x31   :  { %108 = vst [vmem:[#allocation0 + $0x358] sm:$0x3] %v1102_v12  ;;  %v1104_v14 = vld [vmem:[%s1811_s0 + $0xd2] sm:$0x3]  ;;  %v1105_v15 = vld [vmem:[%s1811_s0 + $0xd0] sm:$0x3] }
  0x32   :  { %v836_v16 = vld [vmem:[#allocation0 + $0x141] ss:$8 sm:$0xf]   ;;  %113 = vst [vmem:[#allocation0 + $0x350] sm:$0x3] %v1103_v13 }
  0x33   :  { %118 = vst [vmem:[#allocation0 + $0x348] sm:$0x3] %v1104_v14  ;;  %123 = vst [vmem:[#allocation0 + $0x340] sm:$0x3] %v1105_v15  ;;  %v1186_v17 = vld [vmem:[%s1811_s0 + $0x2e] sm:$0x3]  ;;  %v840_v18 = vsel %vm642_vm0, %v838_v11, %v836_v16 }
  0x34   :  { %v849_v19 = vld [vmem:[#allocation0 + $0x241] ss:$8 sm:$0xf0]   ;;  %528 = vst [vmem:[#allocation0 + $0xb8] sm:$0x3] %v1186_v17  ;;  %841 = vrot.lane.b32.xlu1 %v840_v18, %s1240_s10 }
  0x35   :  { %v1187_v20 = vld [vmem:[%s1811_s0 + $0x2c] sm:$0x3]  ;;  %v1188_v21 = vld [vmem:[%s1811_s0 + $0x2a] sm:$0x3]  ;;  %v1189_v22 = vld [vmem:[%s1811_s0 + $0x28] sm:$0x3] }
  0x36   :  { %533 = vst [vmem:[#allocation0 + $0xb0] sm:$0x3] %v1187_v20  ;;  %v1190_v23 = vld [vmem:[%s1811_s0 + $0x26] sm:$0x3]  ;;  %538 = vst [vmem:[#allocation0 + $0xa8] sm:$0x3] %v1188_v21 }
  0x37   :  { %v847_v24 = vld [vmem:[#allocation0 + $0x241] ss:$8 sm:$0xf]   ;;  %543 = vst [vmem:[#allocation0 + $0xa0] sm:$0x3] %v1189_v22 }
  0x38   :  { %548 = vst [vmem:[#allocation0 + $0x98] sm:$0x3] %v1190_v23  ;;  %v1191_v25 = vld [vmem:[%s1811_s0 + $0x24] sm:$0x3]  ;;  %v851_v26 = vsel %vm642_vm0, %v849_v19, %v847_v24  ;;  %v1192_v27 = vld [vmem:[%s1811_s0 + $0x22] sm:$0x3] }
  0x39   :  { %553 = vst [vmem:[#allocation0 + $0x90] sm:$0x3] %v1191_v25  ;;  %v1193_v28 = vld [vmem:[%s1811_s0 + $0x20] sm:$0x3]  ;;  %v1154_v29 = vld [vmem:[%s1811_s0 + $0x6e] sm:$0x3]  ;;  %852 = vrot.lane.b32.xlu0 %v851_v26, %s1240_s10 }
  0x3a   :  { %v860_v30 = vld [vmem:[#allocation0 + $0x341] ss:$8 sm:$0xf0]   ;;  %558 = vst [vmem:[#allocation0 + $0x88] sm:$0x3] %v1192_v27 }
  0x3b   :  { %563 = vst [vmem:[#allocation0 + $0x80] sm:$0x3] %v1193_v28  ;;  %368 = vst [vmem:[#allocation0 + $0x1b8] sm:$0x3] %v1154_v29  ;;  %v1155_v31 = vld [vmem:[%s1811_s0 + $0x6c] sm:$0x3] }
  0x3c   :  { %373 = vst [vmem:[#allocation0 + $0x1b0] sm:$0x3] %v1155_v31  ;;  %v1156_v32 = vld [vmem:[%s1811_s0 + $0x6a] sm:$0x3]  ;;  %v1157_v33 = vld [vmem:[%s1811_s0 + $0x68] sm:$0x3] }
  0x3d   :  { %v1158_v34 = vld [vmem:[%s1811_s0 + $0x66] sm:$0x3]  ;;  %v858_v35 = vld [vmem:[#allocation0 + $0x341] ss:$8 sm:$0xf]  }
  0x3e   :  { %378 = vst [vmem:[#allocation0 + $0x1a8] sm:$0x3] %v1156_v32  ;;  %383 = vst [vmem:[#allocation0 + $0x1a0] sm:$0x3] %v1157_v33  ;;  %v1159_v36 = vld [vmem:[%s1811_s0 + $0x64] sm:$0x3]  ;;  %v862_v37 = vsel %vm642_vm0, %v860_v30, %v858_v35 }
  0x3f   :  { %388 = vst [vmem:[#allocation0 + $0x198] sm:$0x3] %v1158_v34  ;;  %393 = vst [vmem:[#allocation0 + $0x190] sm:$0x3] %v1159_v36  ;;  %v1160_v38 = vld [vmem:[%s1811_s0 + $0x62] sm:$0x3]  ;;  %863 = vrot.lane.b32.xlu1 %v862_v37, %s1240_s10 }
  0x40   :  { %v1161_v39 = vld [vmem:[%s1811_s0 + $0x60] sm:$0x3]  ;;  %v1122_v40 = vld [vmem:[%s1811_s0 + $0xae] sm:$0x3]  ;;  %398 = vst [vmem:[#allocation0 + $0x188] sm:$0x3] %v1160_v38 }
  0x41   :  { %403 = vst [vmem:[#allocation0 + $0x180] sm:$0x3] %v1161_v39  ;;  %208 = vst [vmem:[#allocation0 + $0x2b8] sm:$0x3] %v1122_v40  ;;  %v1123_v41 = vld [vmem:[%s1811_s0 + $0xac] sm:$0x3] }
  0x42   :  { %v1124_v42 = vld [vmem:[%s1811_s0 + $0xaa] sm:$0x3]  ;;  %v1125_v43 = vld [vmem:[%s1811_s0 + $0xa8] sm:$0x3]  ;;  %213 = vst [vmem:[#allocation0 + $0x2b0] sm:$0x3] %v1123_v41 }
  0x43   :  { %v871_v44 = vld [vmem:[#allocation0 + $0x81] ss:$8 sm:$0xf0]   ;;  %218 = vst [vmem:[#allocation0 + $0x2a8] sm:$0x3] %v1124_v42 }
  0x44   :  { %223 = vst [vmem:[#allocation0 + $0x2a0] sm:$0x3] %v1125_v43  ;;  %v1126_v45 = vld [vmem:[%s1811_s0 + $0xa6] sm:$0x3]  ;;  %v1127_v46 = vld [vmem:[%s1811_s0 + $0xa4] sm:$0x3] }
  0x45   :  { %228 = vst [vmem:[#allocation0 + $0x298] sm:$0x3] %v1126_v45  ;;  %v1128_v47 = vld [vmem:[%s1811_s0 + $0xa2] sm:$0x3]  ;;  %v1129_v48 = vld [vmem:[%s1811_s0 + $0xa0] sm:$0x3] }
  0x46   :  { %v869_v49 = vld [vmem:[#allocation0 + $0x81] ss:$8 sm:$0xf]   ;;  %233 = vst [vmem:[#allocation0 + $0x290] sm:$0x3] %v1127_v46 }
  0x47   :  { %238 = vst [vmem:[#allocation0 + $0x288] sm:$0x3] %v1128_v47  ;;  %243 = vst [vmem:[#allocation0 + $0x280] sm:$0x3] %v1129_v48  ;;  %v1090_v50 = vld [vmem:[%s1811_s0 + $0xee] sm:$0x3]  ;;  %v873_v51 = vsel %vm642_vm0, %v871_v44, %v869_v49 }
  0x48   :  { %48 = vst [vmem:[#allocation0 + $0x3b8] sm:$0x3] %v1090_v50  ;;  %v1091_v52 = vld [vmem:[%s1811_s0 + $0xec] sm:$0x3]  ;;  %v1092_v53 = vld [vmem:[%s1811_s0 + $0xea] sm:$0x3]  ;;  %874 = vrot.lane.b32.xlu0 %v873_v51, %s1240_s10 }
  0x49   :  { %v1093_v54 = vld [vmem:[%s1811_s0 + $0xe8] sm:$0x3]  ;;  %53 = vst [vmem:[#allocation0 + $0x3b0] sm:$0x3] %v1091_v52  ;;  %58 = vst [vmem:[#allocation0 + $0x3a8] sm:$0x3] %v1092_v53 }
  0x4a   :  { %v882_v55 = vld [vmem:[#allocation0 + $0x181] ss:$8 sm:$0xf0]   ;;  %63 = vst [vmem:[#allocation0 + $0x3a0] sm:$0x3] %v1093_v54 }
  0x4b   :  { %v1094_v56 = vld [vmem:[%s1811_s0 + $0xe6] sm:$0x3]  ;;  %v1095_v57 = vld [vmem:[%s1811_s0 + $0xe4] sm:$0x3]  ;;  %v1096_v58 = vld [vmem:[%s1811_s0 + $0xe2] sm:$0x3] }
  0x4c   :  { %68 = vst [vmem:[#allocation0 + $0x398] sm:$0x3] %v1094_v56  ;;  %v1097_v59 = vld [vmem:[%s1811_s0 + $0xe0] sm:$0x3]  ;;  %73 = vst [vmem:[#allocation0 + $0x390] sm:$0x3] %v1095_v57 }
  0x4d   :  { %v880_v60 = vld [vmem:[#allocation0 + $0x181] ss:$8 sm:$0xf]   ;;  %78 = vst [vmem:[#allocation0 + $0x388] sm:$0x3] %v1096_v58 }
  0x4e   :  { %83 = vst [vmem:[#allocation0 + $0x380] sm:$0x3] %v1097_v59  ;;  %v1178_v61 = vld [vmem:[%s1811_s0 + $0x3e] sm:$0x3]  ;;  %v884_v62 = vsel %vm642_vm0, %v882_v55, %v880_v60  ;;  %v1179_v0 = vld [vmem:[%s1811_s0 + $0x3c] sm:$0x3] }
  0x4f   :  { %v893_v63 = vld [vmem:[#allocation0 + $0x281] ss:$8 sm:$0xf0]   ;;  %488 = vst [vmem:[#allocation0 + $0xf8] sm:$0x3] %v1178_v61  ;;  %885 = vrot.lane.b32.xlu1 %v884_v62, %s1240_s10 }
  0x50   :  { %493 = vst [vmem:[#allocation0 + $0xf0] sm:$0x3] %v1179_v0  ;;  %v1180_v1 = vld [vmem:[%s1811_s0 + $0x3a] sm:$0x3]  ;;  %v1181_v2 = vld [vmem:[%s1811_s0 + $0x38] sm:$0x3] }
  0x51   :  { %v1182_v3 = vld [vmem:[%s1811_s0 + $0x36] sm:$0x3]  ;;  %v891_v4 = vld [vmem:[#allocation0 + $0x281] ss:$8 sm:$0xf]  }
  0x52   :  { %498 = vst [vmem:[#allocation0 + $0xe8] sm:$0x3] %v1180_v1  ;;  %503 = vst [vmem:[#allocation0 + $0xe0] sm:$0x3] %v1181_v2  ;;  %v1183_v5 = vld [vmem:[%s1811_s0 + $0x34] sm:$0x3]  ;;  %v895_v6 = vsel %vm642_vm0, %v893_v63, %v891_v4 }
  0x53   :  { %508 = vst [vmem:[#allocation0 + $0xd8] sm:$0x3] %v1182_v3  ;;  %513 = vst [vmem:[#allocation0 + $0xd0] sm:$0x3] %v1183_v5  ;;  %v1184_v7 = vld [vmem:[%s1811_s0 + $0x32] sm:$0x3]  ;;  %896 = vrot.lane.b32.xlu0 %v895_v6, %s1240_s10 }
  0x54   :  { %v1185_v8 = vld [vmem:[%s1811_s0 + $0x30] sm:$0x3]  ;;  %v1146_v9 = vld [vmem:[%s1811_s0 + $0x7e] sm:$0x3]  ;;  %518 = vst [vmem:[#allocation0 + $0xc8] sm:$0x3] %v1184_v7 }
  0x55   :  { %v904_v10 = vld [vmem:[#allocation0 + $0x381] ss:$8 sm:$0xf0]   ;;  %523 = vst [vmem:[#allocation0 + $0xc0] sm:$0x3] %v1185_v8 }
  0x56   :  { %328 = vst [vmem:[#allocation0 + $0x1f8] sm:$0x3] %v1146_v9  ;;  %v1147_v11 = vld [vmem:[%s1811_s0 + $0x7c] sm:$0x3]  ;;  %v1148_v12 = vld [vmem:[%s1811_s0 + $0x7a] sm:$0x3] }
  0x57   :  { %333 = vst [vmem:[#allocation0 + $0x1f0] sm:$0x3] %v1147_v11  ;;  %v1149_v13 = vld [vmem:[%s1811_s0 + $0x78] sm:$0x3]  ;;  %v1150_v14 = vld [vmem:[%s1811_s0 + $0x76] sm:$0x3] }
  0x58   :  { %v902_v15 = vld [vmem:[#allocation0 + $0x381] ss:$8 sm:$0xf]   ;;  %338 = vst [vmem:[#allocation0 + $0x1e8] sm:$0x3] %v1148_v12 }
  0x59   :  { %343 = vst [vmem:[#allocation0 + $0x1e0] sm:$0x3] %v1149_v13  ;;  %348 = vst [vmem:[#allocation0 + $0x1d8] sm:$0x3] %v1150_v14  ;;  %v1151_v16 = vld [vmem:[%s1811_s0 + $0x74] sm:$0x3]  ;;  %v906_v17 = vsel %vm642_vm0, %v904_v10, %v902_v15 }
  0x5a   :  { %353 = vst [vmem:[#allocation0 + $0x1d0] sm:$0x3] %v1151_v16  ;;  %v1152_v18 = vld [vmem:[%s1811_s0 + $0x72] sm:$0x3]  ;;  %v1153_v19 = vld [vmem:[%s1811_s0 + $0x70] sm:$0x3]  ;;  %907 = vrot.lane.b32.xlu1 %v906_v17, %s1240_s10 }
  0x5b   :  { %v1114_v20 = vld [vmem:[%s1811_s0 + $0xbe] sm:$0x3]  ;;  %358 = vst [vmem:[#allocation0 + $0x1c8] sm:$0x3] %v1152_v18  ;;  %363 = vst [vmem:[#allocation0 + $0x1c0] sm:$0x3] %v1153_v19 }
  0x5c   :  { %168 = vst [vmem:[#allocation0 + $0x2f8] sm:$0x3] %v1114_v20  ;;  %v1115_v21 = vld [vmem:[%s1811_s0 + $0xbc] sm:$0x3]  ;;  %v1116_v22 = vld [vmem:[%s1811_s0 + $0xba] sm:$0x3] }
  0x5d   :  { %v1117_v23 = vld [vmem:[%s1811_s0 + $0xb8] sm:$0x3]  ;;  %173 = vst [vmem:[#allocation0 + $0x2f0] sm:$0x3] %v1115_v21  ;;  %178 = vst [vmem:[#allocation0 + $0x2e8] sm:$0x3] %v1116_v22 }
  0x5e   :  { %v915_v24 = vld [vmem:[#allocation0 + $0xc1] ss:$8 sm:$0xf0]   ;;  %183 = vst [vmem:[#allocation0 + $0x2e0] sm:$0x3] %v1117_v23 }
  0x5f   :  { %v1118_v25 = vld [vmem:[%s1811_s0 + $0xb6] sm:$0x3]  ;;  %v1119_v26 = vld [vmem:[%s1811_s0 + $0xb4] sm:$0x3]  ;;  %v1120_v27 = vld [vmem:[%s1811_s0 + $0xb2] sm:$0x3] }
  0x60   :  { %188 = vst [vmem:[#allocation0 + $0x2d8] sm:$0x3] %v1118_v25  ;;  %v1121_v28 = vld [vmem:[%s1811_s0 + $0xb0] sm:$0x3]  ;;  %193 = vst [vmem:[#allocation0 + $0x2d0] sm:$0x3] %v1119_v26 }
  0x61   :  { %v913_v29 = vld [vmem:[#allocation0 + $0xc1] ss:$8 sm:$0xf]   ;;  %198 = vst [vmem:[#allocation0 + $0x2c8] sm:$0x3] %v1120_v27 }
  0x62   :  { %203 = vst [vmem:[#allocation0 + $0x2c0] sm:$0x3] %v1121_v28  ;;  %v1082_v30 = vld [vmem:[%s1811_s0 + $0xfe] sm:$0x3]  ;;  %v917_v31 = vsel %vm642_vm0, %v915_v24, %v913_v29  ;;  %v1083_v32 = vld [vmem:[%s1811_s0 + $0xfc] sm:$0x3] }
  0x63   :  { %8 = vst [vmem:[#allocation0 + $0x3f8] sm:$0x3] %v1082_v30  ;;  %v1084_v33 = vld [vmem:[%s1811_s0 + $0xfa] sm:$0x3]  ;;  %v1085_v34 = vld [vmem:[%s1811_s0 + $0xf8] sm:$0x3]  ;;  %918 = vrot.lane.b32.xlu0 %v917_v31, %s1240_s10 }
  0x64   :  { %v926_v35 = vld [vmem:[#allocation0 + $0x1c1] ss:$8 sm:$0xf0]   ;;  %13 = vst [vmem:[#allocation0 + $0x3f0] sm:$0x3] %v1083_v32 }
  0x65   :  { %18 = vst [vmem:[#allocation0 + $0x3e8] sm:$0x3] %v1084_v33  ;;  %23 = vst [vmem:[#allocation0 + $0x3e0] sm:$0x3] %v1085_v34  ;;  %v1086_v36 = vld [vmem:[%s1811_s0 + $0xf6] sm:$0x3] }
  0x66   :  { %28 = vst [vmem:[#allocation0 + $0x3d8] sm:$0x3] %v1086_v36  ;;  %v1087_v37 = vld [vmem:[%s1811_s0 + $0xf4] sm:$0x3]  ;;  %v1088_v38 = vld [vmem:[%s1811_s0 + $0xf2] sm:$0x3] }
  0x67   :  { %v1089_v39 = vld [vmem:[%s1811_s0 + $0xf0] sm:$0x3]  ;;  %33 = vst [vmem:[#allocation0 + $0x3d0] sm:$0x3] %v1087_v37  ;;  %38 = vst [vmem:[#allocation0 + $0x3c8] sm:$0x3] %v1088_v38 }
  0x68   :  { %v924_v40 = vld [vmem:[#allocation0 + $0x1c1] ss:$8 sm:$0xf]   ;;  %43 = vst [vmem:[#allocation0 + $0x3c0] sm:$0x3] %v1089_v39 }
  0x69   :  { %v640_v41 = vld [vmem:[#allocation0] ss:$8 sm:$0xf]   ;;  %v928_v42 = vsel %vm642_vm0, %v926_v35, %v924_v40  ;;  %v937_v43 = vld [vmem:[#allocation0 + $0x2c1] ss:$8 sm:$0xf0]  }
  0x6a   :  { %v641_v44 = vld [vmem:[#allocation0] ss:$8 sm:$0xf0]   ;;  %929 = vrot.lane.b32.xlu1 %v928_v42, %s1240_s10  ;;  %v935_v48 = vld [vmem:[#allocation0 + $0x2c1] ss:$8 sm:$0xf]  }
  0x6b   :  { %v643_v45 = vsel %vm642_vm0, %v641_v44, %v640_v41  ;;  %v710_v46 = vld [vmem:[#allocation0 + $0x200] ss:$8 sm:$0xf]   ;;  %v939_v51 = vsel %vm642_vm0, %v937_v43, %v935_v48 }
  0x6c   :  { %v712_v47 = vld [vmem:[#allocation0 + $0x200] ss:$8 sm:$0xf0]   ;;  %645 = vst.msk [vmem:[%s1812_s1] sm:$0xff] %vm644_vm1, %v643_v45   ;;  %940 = vrot.lane.b32.xlu0 %v939_v51, %s1240_s10 }
  0x6d   :  { %v714_v49 = vsel %vm642_vm0, %v712_v47, %v710_v46  ;;  %v674_v50 = vld [vmem:[#allocation0 + $0x100] ss:$8 sm:$0xf]   ;;  %v948_v54 = vld [vmem:[#allocation0 + $0x3c1] ss:$8 sm:$0xf0]  }
  0x6e   :  { %1216 = vst.msk [vmem:[%s1812_s1 + $0x40] sm:$0xff] %vm644_vm1, %v714_v49   ;;  %v676_v52 = vld [vmem:[#allocation0 + $0x100] ss:$8 sm:$0xf0]  }
  0x6f   :  { %v746_v53 = vld [vmem:[#allocation0 + $0x300] ss:$8 sm:$0xf]   ;;  %v678_v55 = vsel %vm642_vm0, %v676_v52, %v674_v50  ;;  %v946_v60 = vld [vmem:[#allocation0 + $0x3c1] ss:$8 sm:$0xf]  }
  0x70   :  { %v748_v56 = vld [vmem:[#allocation0 + $0x300] ss:$8 sm:$0xf0]   ;;  %1212 = vst.msk [vmem:[%s1812_s1 + $0x20] sm:$0xff] %vm644_vm1, %v678_v55   ;;  %v950_v63 = vsel %vm642_vm0, %v948_v54, %v946_v60 }
  0x71   :  { %v750_v57 = vsel %vm642_vm0, %v748_v56, %v746_v53  ;;  %v647_v58 = vld [vmem:[#allocation0 + $0x40] ss:$8 sm:$0xf]   ;;  %951 = vrot.lane.b32.xlu1 %v950_v63, %s1240_s10 }
  0x72   :  { %v649_v59 = vld [vmem:[#allocation0 + $0x40] ss:$8 sm:$0xf0]   ;;  %1220 = vst.msk [vmem:[%s1812_s1 + $0x60] sm:$0xff] %vm644_vm1, %v750_v57  }
  0x73   :  { %v651_v61 = vsel %vm642_vm0, %v649_v59, %v647_v58  ;;  %v683_v62 = vld [vmem:[#allocation0 + $0x140] ss:$8 sm:$0xf]  }
  0x74   :  { %1209 = vst.msk [vmem:[%s1812_s1 + $0x8] sm:$0xff] %vm644_vm1, %v651_v61   ;;  %v685_v0 = vld [vmem:[#allocation0 + $0x140] ss:$8 sm:$0xf0]  }
  0x75   :  { %v719_v1 = vld [vmem:[#allocation0 + $0x240] ss:$8 sm:$0xf]   ;;  %v687_v2 = vsel %vm642_vm0, %v685_v0, %v683_v62 }
  0x76   :  { %v721_v3 = vld [vmem:[#allocation0 + $0x240] ss:$8 sm:$0xf0]   ;;  %1213 = vst.msk [vmem:[%s1812_s1 + $0x28] sm:$0xff] %vm644_vm1, %v687_v2  }
  0x77   :  { %v755_v4 = vld [vmem:[#allocation0 + $0x340] ss:$8 sm:$0xf]   ;;  %v723_v5 = vsel %vm642_vm0, %v721_v3, %v719_v1 }
  0x78   :  { %v757_v6 = vld [vmem:[#allocation0 + $0x340] ss:$8 sm:$0xf0]   ;;  %1217 = vst.msk [vmem:[%s1812_s1 + $0x48] sm:$0xff] %vm644_vm1, %v723_v5  }
  0x79   :  { %v656_v7 = vld [vmem:[#allocation0 + $0x80] ss:$8 sm:$0xf]   ;;  %v759_v8 = vsel %vm642_vm0, %v757_v6, %v755_v4 }
  0x7a   :  { %v658_v9 = vld [vmem:[#allocation0 + $0x80] ss:$8 sm:$0xf0]   ;;  %1221 = vst.msk [vmem:[%s1812_s1 + $0x68] sm:$0xff] %vm644_vm1, %v759_v8  }
  0x7b   :  { %v692_v10 = vld [vmem:[#allocation0 + $0x180] ss:$8 sm:$0xf]   ;;  %v660_v11 = vsel %vm642_vm0, %v658_v9, %v656_v7 }
  0x7c   :  { %v694_v12 = vld [vmem:[#allocation0 + $0x180] ss:$8 sm:$0xf0]   ;;  %1210 = vst.msk [vmem:[%s1812_s1 + $0x10] sm:$0xff] %vm644_vm1, %v660_v11  }
  0x7d   :  { %v728_v13 = vld [vmem:[#allocation0 + $0x280] ss:$8 sm:$0xf]   ;;  %v696_v14 = vsel %vm642_vm0, %v694_v12, %v692_v10 }
  0x7e   :  { %v730_v15 = vld [vmem:[#allocation0 + $0x280] ss:$8 sm:$0xf0]   ;;  %1214 = vst.msk [vmem:[%s1812_s1 + $0x30] sm:$0xff] %vm644_vm1, %v696_v14  }
  0x7f   :  { %v764_v16 = vld [vmem:[#allocation0 + $0x380] ss:$8 sm:$0xf]   ;;  %v732_v17 = vsel %vm642_vm0, %v730_v15, %v728_v13 }
  0x80   :  { %v766_v18 = vld [vmem:[#allocation0 + $0x380] ss:$8 sm:$0xf0]   ;;  %1218 = vst.msk [vmem:[%s1812_s1 + $0x50] sm:$0xff] %vm644_vm1, %v732_v17  }
  0x81   :  { %v665_v19 = vld [vmem:[#allocation0 + $0xc0] ss:$8 sm:$0xf]   ;;  %v768_v20 = vsel %vm642_vm0, %v766_v18, %v764_v16 }
  0x82   :  { %v667_v21 = vld [vmem:[#allocation0 + $0xc0] ss:$8 sm:$0xf0]   ;;  %1222 = vst.msk [vmem:[%s1812_s1 + $0x70] sm:$0xff] %vm644_vm1, %v768_v20  }
  0x83   :  { %v701_v22 = vld [vmem:[#allocation0 + $0x1c0] ss:$8 sm:$0xf]   ;;  %v669_v23 = vsel %vm642_vm0, %v667_v21, %v665_v19 }
  0x84   :  { %v703_v24 = vld [vmem:[#allocation0 + $0x1c0] ss:$8 sm:$0xf0]   ;;  %1211 = vst.msk [vmem:[%s1812_s1 + $0x18] sm:$0xff] %vm644_vm1, %v669_v23  }
  0x85   :  { %v737_v25 = vld [vmem:[#allocation0 + $0x2c0] ss:$8 sm:$0xf]   ;;  %v705_v26 = vsel %vm642_vm0, %v703_v24, %v701_v22 }
  0x86   :  { %v739_v27 = vld [vmem:[#allocation0 + $0x2c0] ss:$8 sm:$0xf0]   ;;  %1215 = vst.msk [vmem:[%s1812_s1 + $0x38] sm:$0xff] %vm644_vm1, %v705_v26  }
  0x87   :  { %v773_v28 = vld [vmem:[#allocation0 + $0x3c0] ss:$8 sm:$0xf]   ;;  %v741_v29 = vsel %vm642_vm0, %v739_v27, %v737_v25  ;;  %v788_v32 = vpop.permute.xlu0 %787  }
  0x88   :  { %v775_v30 = vld [vmem:[#allocation0 + $0x3c0] ss:$8 sm:$0xf0]   ;;  %1219 = vst.msk [vmem:[%s1812_s1 + $0x58] sm:$0xff] %vm644_vm1, %v741_v29  }
  0x89   :  { %v777_v31 = vsel %vm642_vm0, %v775_v30, %v773_v28  ;;  %790 = vst.msk [vmem:[%s1812_s1] sm:$0xff] %vm789_vm2, %v788_v32  }
  0x8a   :  { %1223 = vst.msk [vmem:[%s1812_s1 + $0x78] sm:$0xff] %vm644_vm1, %v777_v31  }
  0x8c   :  { %v809_v33 = vpop.permute.xlu1 %808  }
  0x8d   :  { %1225 = vst.msk [vmem:[%s1812_s1 + $0x40] sm:$0xff] %vm789_vm2, %v809_v33  }
  0x90   :  { %v798_v34 = vpop.permute.xlu0 %797  }
  0x91   :  { %1224 = vst.msk [vmem:[%s1812_s1 + $0x20] sm:$0xff] %vm789_vm2, %v798_v34  }
  0x97   :  { %v820_v35 = vpop.permute.xlu1 %819  }
  0x98   :  { %1226 = vst.msk [vmem:[%s1812_s1 + $0x60] sm:$0xff] %vm789_vm2, %v820_v35  }
  0xa0   :  { %v831_v36 = vpop.permute.xlu0 %830  }
  0xa1   :  { %1227 = vst.msk [vmem:[%s1812_s1 + $0x8] sm:$0xff] %vm789_vm2, %v831_v36  }
  0xa6   :  { %v842_v37 = vpop.permute.xlu1 %841  }
  0xa7   :  { %1228 = vst.msk [vmem:[%s1812_s1 + $0x28] sm:$0xff] %vm789_vm2, %v842_v37  }
  0xab   :  { %v853_v38 = vpop.permute.xlu0 %852  }
  0xac   :  { %1229 = vst.msk [vmem:[%s1812_s1 + $0x48] sm:$0xff] %vm789_vm2, %v853_v38  }
  0xb1   :  { %v864_v39 = vpop.permute.xlu1 %863  }
  0xb2   :  { %1230 = vst.msk [vmem:[%s1812_s1 + $0x68] sm:$0xff] %vm789_vm2, %v864_v39  }
  0xba   :  { %v875_v40 = vpop.permute.xlu0 %874  }
  0xbb   :  { %1231 = vst.msk [vmem:[%s1812_s1 + $0x10] sm:$0xff] %vm789_vm2, %v875_v40  }
  0xc1   :  { %v886_v41 = vpop.permute.xlu1 %885  }
  0xc2   :  { %1232 = vst.msk [vmem:[%s1812_s1 + $0x30] sm:$0xff] %vm789_vm2, %v886_v41  }
  0xc5   :  { %v897_v42 = vpop.permute.xlu0 %896  }
  0xc6   :  { %1233 = vst.msk [vmem:[%s1812_s1 + $0x50] sm:$0xff] %vm789_vm2, %v897_v42  }
  0xcc   :  { %v908_v43 = vpop.permute.xlu1 %907  }
  0xcd   :  { %1234 = vst.msk [vmem:[%s1812_s1 + $0x70] sm:$0xff] %vm789_vm2, %v908_v43  }
  0xd5   :  { %v919_v44 = vpop.permute.xlu0 %918  }
  0xd6   :  { %1235 = vst.msk [vmem:[%s1812_s1 + $0x18] sm:$0xff] %vm789_vm2, %v919_v44  }
  0xdc   :  { %v930_v45 = vpop.permute.xlu1 %929  }
  0xdd   :  { %1236 = vst.msk [vmem:[%s1812_s1 + $0x38] sm:$0xff] %vm789_vm2, %v930_v45  }
  0xde   :  { %v941_v46 = vpop.permute.xlu0 %940  }
  0xdf   :  { %1237 = vst.msk [vmem:[%s1812_s1 + $0x58] sm:$0xff] %vm789_vm2, %v941_v46  }
  0xe3   :  { %v952_v47 = vpop.permute.xlu1 %951  }
  0xe4   :  { %1238 = vst.msk [vmem:[%s1812_s1 + $0x78] sm:$0xff] %vm789_vm2, %v952_v47  }

// kernel: ffc_bn_act_forward.9
= control target key start
LH: loop header
LB: loop body
LE: loop exit
PB: predicated region body
PF: predicated region fallthrough
CT: control target
= control target key end

     0   :  { %v395_v3 = vmov 0.0   ;;  %vm30_vm0 = vcmask 64512   ;;  %v396_v25 = vmov 0   ;;  %v397_v33 = vmov 1   ;;  %s398_s11 = smov 1   ;;  %s478_s1 = inlined_call_operand.vmem [shape: f32[8,512], index: 1, kind: input, shape index: {}]   ;;  %s479_s3 = inlined_call_operand.vmem [shape: f32[8,8], index: 3, kind: input, shape index: {}]   ;;  %s480_s0 = inlined_call_operand.vmem [shape: f32[8,512], index: 0, kind: input, shape index: {}]   ;;  %s481_s2 = inlined_call_operand.vmem [shape: f32[8,8], index: 2, kind: input, shape index: {}]   ;;  %s482_s4 = inlined_call_operand.vmem [shape: f32[8,2], index: 4, kind: input, shape index: {}]   ;;  %s483_s5 = inlined_call_operand.vmem [shape: f32[8,512], index: 5, kind: output, shape index: {}]  }
   0x1   :  { %v27_v0 = vld [vmem:[%s478_s1 + $0x8] sm:$0xff]  ;;  %v29_v1 = vld [vmem:[%s478_s1 + $0x18] sm:$0xff]  ;;  %v26_v2 = vld [vmem:[%s478_s1] sm:$0xff]  ;;  %98 = vmatprep.mubr.f32.mxu0 %v395_v3  ;;  %169 = vmatprep.mubr.f32.mxu1 %v395_v3 }
   0x2   :  { %34 = vmatprep.subr.mxu0 %v27_v0  ;;  %105 = vmatprep.subr.mxu1 %v29_v1  ;;  %v28_v4 = vld [vmem:[%s478_s1 + $0x10] sm:$0xff]  ;;  %v25_v5 = vld [vmem:[%s479_s3] sm:$0xff]  ;;  %v22_v6 = vld [vmem:[%s480_s0 + $0x8] sm:$0xff] }
   0x3   :  { %35 = vmatpush1.msra.mxu0 %v26_v2  ;;  %106 = vmatpush1.msra.mxu1 %v28_v4  ;;  %v21_v7 = vld [vmem:[%s480_s0] sm:$0xff]  ;;  %v24_v8 = vld [vmem:[%s480_s0 + $0x18] sm:$0xff]  ;;  %v23_v9 = vld [vmem:[%s480_s0 + $0x10] sm:$0xff] }
   0x4   :  { %379 = vmatmul.mubr.msk.f32.vlgmr.msra.gmra.mrb[0].mxu0 %vm30_vm0, %v25_v5  ;;  %380 = vmatmul.mubr.msk.f32.vlgmr.msra.gmra.mrb[0].mxu1 %vm30_vm0, %v25_v5  ;;  %v20_v10 = vld [vmem:[%s481_s2] sm:$0xff] }
   0x5   :  { %179 = vmatprep.subr.mxu0 %v22_v6  ;;  %250 = vmatprep.subr.mxu1 %v24_v8  ;;  %v339_v34 = vld [vmem:[%s482_s4] sm:$0xff] }
   0x6   :  { %180 = vmatpush1.msra.mxu0 %v21_v7  ;;  %251 = vmatpush1.msra.mxu1 %v23_v9 }
   0x7   :  { %243 = vmatprep.mubr.f32.mxu0 %v395_v3  ;;  %314 = vmatprep.mubr.f32.mxu1 %v395_v3 }
   0x8   :  { %391 = vset.pattern.permute.xlu1 %v396_v25  ;;  %392 = vset.pattern.permute.xlu0 %v397_v33 }
   0xc   :  { %381 = vmatmul.mubr.msk.f32.vlgmr.msra.gmra.mrb[0].mxu0 %vm30_vm0, %v20_v10  ;;  %382 = vmatmul.mubr.msk.f32.vlgmr.msra.gmra.mrb[0].mxu1 %vm30_vm0, %v20_v10 }
  0xdf   :  { %v245_v11 = vpop.f32.mrb[0].mxu0  ;;  %v316_v12 = vpop.f32.mrb[0].mxu1 }
  0xe0   :  { %v326_v13 = vmul.f32 %v245_v11, %v245_v11  ;;  %v247_v14 = vpop.f32.mrb[1].mxu0  ;;  %v318_v15 = vpop.f32.mrb[1].mxu1  ;;  %v328_v18 = vmul.f32 %v316_v12, %v316_v12 }
  0xe1   :  { %v321_v16 = vadd.f32 %v247_v14, %v245_v11  ;;  %v327_v17 = vmul.f32 %v247_v14, %v247_v14  ;;  %v329_v21 = vmul.f32 %v318_v15, %v318_v15 }
  0xe3   :  { %v330_v19 = vadd.f32 %v327_v17, %v326_v13  ;;  %v322_v20 = vadd.f32 %v321_v16, %v316_v12 }
  0xe5   :  { %v323_v22 = vadd.f32 %v322_v20, %v318_v15  ;;  %v331_v23 = vadd.f32 %v330_v19, %v328_v18 }
  0xe7   :  { %324 = vadd.xlane.f32.xlu0 %v323_v22  ;;  %v332_v24 = vadd.f32 %v331_v23, %v329_v21 }
  0xeb   :  { %333 = vadd.xlane.f32.xlu0 %v332_v24 }
 0x174   :  { %v325_v26 = vpop.xlane.xlu0 %324 }
 0x175   :  { %v335_v27 = vmul.f32 0.001953125, %v325_v26 }
 0x177   :  { %v337_v29 = vmul.f32 %v335_v27, %v335_v27 }
 0x178   :  { %v334_v28 = vpop.xlane.xlu0 %333 }
 0x179   :  { %v336_v30 = vmul.f32 0.001953125, %v334_v28 }
 0x17b   :  { %v338_v31 = vsub.f32 %v336_v30, %v337_v29 }
 0x17d   :  { %v340_v32 = vadd.f32 1e-05, %v338_v31 }
 0x17f   :  { %393 = vrsqrt.f32 %v340_v32 }
 0x189   :  { %v394_v35 = vpop.eup %393 }
 0x18a   :  { %v342_v36 = vmul.f32 %v394_v35, %v339_v34 }
 0x18c   :  { %v343_v37 = vmul.f32 %v342_v36, %v335_v27 }
 0x18e   :  { %345 = vrot.lane.b32.xlu1 %v343_v37, %s398_s11 }
 0x192   :  { %351 = vperm.xlu1 %391, %v342_v36  }
 0x200   :  { %v346_v38 = vpop.permute.xlu1 %345 }
 0x201   :  { %v348_v39 = vsub.f32 %v339_v34, %v346_v38 }
 0x203   :  { %360 = vperm.xlu0 %392, %v348_v39  }
 0x211   :  { %v352_v40 = vpop.permute.xlu1 %351 }
 0x212   :  { %v354_v41 = vmul.f32 %v352_v40, %v245_v11  ;;  %v355_v42 = vmul.f32 %v352_v40, %v247_v14  ;;  %v356_v43 = vmul.f32 %v352_v40, %v316_v12  ;;  %v357_v44 = vmul.f32 %v352_v40, %v318_v15 }
 0x282   :  { %v361_v45 = vpop.permute.xlu0 %360 }
 0x283   :  { %v363_v46 = vadd.f32 %v361_v45, %v354_v41  ;;  %v364_v47 = vadd.f32 %v361_v45, %v355_v42  ;;  %v365_v48 = vadd.f32 %v361_v45, %v356_v43  ;;  %v366_v49 = vadd.f32 %v361_v45, %v357_v44 }
 0x285   :  { %v367_v50 = vmax.f32 %v363_v46, 0.0  ;;  %v368_v51 = vmax.f32 %v364_v47, 0.0  ;;  %v369_v52 = vmax.f32 %v365_v48, 0.0  ;;  %v370_v53 = vmax.f32 %v366_v49, 0.0 }
 0x287   :  { %371 = vst [vmem:[%s483_s5] sm:$0xff] %v367_v50  ;;  %372 = vst [vmem:[%s483_s5 + $0x8] sm:$0xff] %v368_v51 }
 0x288   :  { %373 = vst [vmem:[%s483_s5 + $0x10] sm:$0xff] %v369_v52  ;;  %374 = vst [vmem:[%s483_s5 + $0x18] sm:$0xff] %v370_v53 }

// kernel: ffc_bn_act_forward.5
= control target key start
LH: loop header
LB: loop body
LE: loop exit
PB: predicated region body
PF: predicated region fallthrough
CT: control target
= control target key end

     0   :  { %v233_v2 = vmov 0.0   ;;  %vm19_vm0 = vcmask 64512   ;;  %v234_v20 = vmov 0   ;;  %v235_v28 = vmov 1   ;;  %s236_s22 = smov 1   ;;  %s287_s0 = inlined_call_operand.vmem [shape: f32[8,512], index: 0, kind: input, shape index: {}]   ;;  %s288_s1 = inlined_call_operand.vmem [shape: f32[8,8], index: 1, kind: input, shape index: {}]   ;;  %s289_s2 = inlined_call_operand.vmem [shape: f32[8,2], index: 2, kind: input, shape index: {}]   ;;  %s290_s3 = inlined_call_operand.vmem [shape: f32[8,512], index: 3, kind: output, shape index: {}]  }
   0x1   :  { %v16_v0 = vld [vmem:[%s287_s0 + $0x8] sm:$0xff]  ;;  %v15_v1 = vld [vmem:[%s287_s0] sm:$0xff]  ;;  %87 = vmatprep.mubr.f32.mxu0 %v233_v2  ;;  %158 = vmatprep.mubr.f32.mxu1 %v233_v2  ;;  %v18_v4 = vld [vmem:[%s287_s0 + $0x18] sm:$0xff] }
   0x2   :  { %v14_v3 = vld [vmem:[%s288_s1] sm:$0xff]  ;;  %23 = vmatprep.subr.mxu0 %v16_v0  ;;  %v17_v5 = vld [vmem:[%s287_s0 + $0x10] sm:$0xff]  ;;  %94 = vmatprep.subr.mxu1 %v18_v4 }
   0x3   :  { %24 = vmatpush1.msra.mxu0 %v15_v1  ;;  %95 = vmatpush1.msra.mxu1 %v17_v5  ;;  %v183_v29 = vld [vmem:[%s289_s2] sm:$0xff] }
   0x4   :  { %223 = vmatmul.mubr.msk.f32.vlgmr.msra.gmra.mrb[0].mxu0 %vm19_vm0, %v14_v3  ;;  %224 = vmatmul.mubr.msk.f32.vlgmr.msra.gmra.mrb[0].mxu1 %vm19_vm0, %v14_v3 }
   0x5   :  { %229 = vset.pattern.permute.xlu1 %v234_v20  ;;  %230 = vset.pattern.permute.xlu0 %v235_v28 }
  0xd7   :  { %v89_v6 = vpop.f32.mrb[0].mxu0  ;;  %v160_v9 = vpop.f32.mrb[0].mxu1 }
  0xd8   :  { %v170_v7 = vmul.f32 %v89_v6, %v89_v6  ;;  %v91_v8 = vpop.f32.mrb[1].mxu0  ;;  %v172_v12 = vmul.f32 %v160_v9, %v160_v9  ;;  %v162_v13 = vpop.f32.mrb[1].mxu1 }
  0xd9   :  { %v165_v10 = vadd.f32 %v91_v8, %v89_v6  ;;  %v171_v11 = vmul.f32 %v91_v8, %v91_v8  ;;  %v173_v16 = vmul.f32 %v162_v13, %v162_v13 }
  0xdb   :  { %v174_v14 = vadd.f32 %v171_v11, %v170_v7  ;;  %v166_v15 = vadd.f32 %v165_v10, %v160_v9 }
  0xdd   :  { %v167_v17 = vadd.f32 %v166_v15, %v162_v13  ;;  %v175_v18 = vadd.f32 %v174_v14, %v172_v12 }
  0xdf   :  { %168 = vadd.xlane.f32.xlu0 %v167_v17  ;;  %v176_v19 = vadd.f32 %v175_v18, %v173_v16 }
  0xe3   :  { %177 = vadd.xlane.f32.xlu0 %v176_v19 }
 0x16c   :  { %v169_v21 = vpop.xlane.xlu0 %168 }
 0x16d   :  { %v179_v22 = vmul.f32 0.001953125, %v169_v21 }
 0x16f   :  { %v181_v24 = vmul.f32 %v179_v22, %v179_v22 }
 0x170   :  { %v178_v23 = vpop.xlane.xlu0 %177 }
 0x171   :  { %v180_v25 = vmul.f32 0.001953125, %v178_v23 }
 0x173   :  { %v182_v26 = vsub.f32 %v180_v25, %v181_v24 }
 0x175   :  { %v184_v27 = vadd.f32 1e-05, %v182_v26 }
 0x177   :  { %231 = vrsqrt.f32 %v184_v27 }
 0x181   :  { %v232_v30 = vpop.eup %231 }
 0x182   :  { %v186_v31 = vmul.f32 %v232_v30, %v183_v29 }
 0x184   :  { %v187_v32 = vmul.f32 %v186_v31, %v179_v22 }
 0x186   :  { %189 = vrot.lane.b32.xlu1 %v187_v32, %s236_s22 }
 0x18a   :  { %195 = vperm.xlu1 %229, %v186_v31  }
 0x1f8   :  { %v190_v33 = vpop.permute.xlu1 %189 }
 0x1f9   :  { %v192_v34 = vsub.f32 %v183_v29, %v190_v33 }
 0x1fb   :  { %204 = vperm.xlu0 %230, %v192_v34  }
 0x209   :  { %v196_v35 = vpop.permute.xlu1 %195 }
 0x20a   :  { %v198_v36 = vmul.f32 %v196_v35, %v89_v6  ;;  %v199_v37 = vmul.f32 %v196_v35, %v91_v8  ;;  %v200_v38 = vmul.f32 %v196_v35, %v160_v9  ;;  %v201_v39 = vmul.f32 %v196_v35, %v162_v13 }
 0x27a   :  { %v205_v40 = vpop.permute.xlu0 %204 }
 0x27b   :  { %v207_v41 = vadd.f32 %v205_v40, %v198_v36  ;;  %v208_v42 = vadd.f32 %v205_v40, %v199_v37  ;;  %v209_v43 = vadd.f32 %v205_v40, %v200_v38  ;;  %v210_v44 = vadd.f32 %v205_v40, %v201_v39 }
 0x27d   :  { %v211_v45 = vmax.f32 %v207_v41, 0.0  ;;  %v212_v46 = vmax.f32 %v208_v42, 0.0  ;;  %v213_v47 = vmax.f32 %v209_v43, 0.0  ;;  %v214_v48 = vmax.f32 %v210_v44, 0.0 }
 0x27f   :  { %215 = vst [vmem:[%s290_s3] sm:$0xff] %v211_v45  ;;  %216 = vst [vmem:[%s290_s3 + $0x8] sm:$0xff] %v212_v46 }
 0x280   :  { %217 = vst [vmem:[%s290_s3 + $0x10] sm:$0xff] %v213_v47  ;;  %218 = vst [vmem:[%s290_s3 + $0x18] sm:$0xff] %v214_v48 }

</bundles_post_ra>
